<compile_context>
chip_gen: v7x
topology: tpu7x:2x2x1
jax: 0.10.0
libtpu: 0.0.40
codegen_flags: <defaults>
</compile_context>

<pallas_src>
import jax
import jax.numpy as jnp
from jax.experimental import pallas as pl
from jax.experimental.pallas import tpu as pltpu

INPUT_DIM = 256
HIDDEN_DIM = 512
OUT_DIM = 768
LN_EPS = 1e-5


def _round_up(n, m):
    return ((n + m - 1) // m) * m


def _default_block_b():
    # v5e MXU is 128-wide and scoped VMEM smaller -> 128-row tiles saturate it.
    # v6e/v7x MXU is 256-wide -> 256-row tiles.
    try:
        kind = jax.devices()[0].device_kind.lower()
    except Exception:  # pragma: no cover - defensive
        kind = ""
    return 128 if "v5" in kind else 256


def _decoder_kernel(x_ref, w1_ref, b1_ref, w2_ref, b2_ref, g_ref, beta_ref, o_ref):
    # ---- Linear 1: bf16 MXU matmul, f32 accumulate; bias + ReLU in f32 ----
    h = jnp.dot(x_ref[...], w1_ref[...], preferred_element_type=jnp.float32)
    h = jnp.maximum(h + b1_ref[...], 0.0)

    # Dropout(0.1): identity in eval mode.

    # ---- Linear 2: cast activations once to bf16, f32 accumulate ----
    y = jnp.dot(h.astype(jnp.bfloat16), w2_ref[...],
                preferred_element_type=jnp.float32)
    y = y + b2_ref[...]

    # ---- LayerNorm(768): single-pass stats (sum + sum of squares) ----
    inv_n = jnp.float32(1.0 / OUT_DIM)
    s = jnp.sum(y, axis=-1, keepdims=True)
    ss = jnp.sum(y * y, axis=-1, keepdims=True)
    mean = s * inv_n
    var = ss * inv_n - mean * mean
    normed = (y - mean) * jax.lax.rsqrt(var + LN_EPS)
    o_ref[...] = (normed * g_ref[...] + beta_ref[...]).astype(o_ref.dtype)


def dance_to_text_decoder_forward(x, w1, b1, w2, b2, gamma, beta, *, block_b=None):
    """Pallas forward pass. Weights are [in, out] (x @ W + b == PyTorch x @ W.T + b)."""
    B, D = x.shape
    assert D == INPUT_DIM

    if block_b is None:
        block_b = _default_block_b()
    # Clamp the tile to the (sublane-rounded) batch so tiny batches stay tiny.
    block_b = max(8, min(int(block_b), _round_up(B, 8)))
    B_pad = _round_up(B, block_b)

    # bf16 matmul inputs (cast once at the boundary); everything else f32.
    x_in = x.astype(jnp.bfloat16)
    if B_pad != B:
        x_in = jnp.pad(x_in, ((0, B_pad - B), (0, 0)))
    w1b = w1.astype(jnp.bfloat16)
    w2b = w2.astype(jnp.bfloat16)
    b1r = jnp.asarray(b1, jnp.float32).reshape(1, HIDDEN_DIM)
    b2r = jnp.asarray(b2, jnp.float32).reshape(1, OUT_DIM)
    gr = jnp.asarray(gamma, jnp.float32).reshape(1, OUT_DIM)
    br = jnp.asarray(beta, jnp.float32).reshape(1, OUT_DIM)

    grid = (B_pad // block_b,)

    in_specs = [
        pl.BlockSpec((block_b, INPUT_DIM), lambda i: (i, 0)),       # x tile
        pl.BlockSpec((INPUT_DIM, HIDDEN_DIM), lambda i: (0, 0)),    # W1 (grid-invariant)
        pl.BlockSpec((1, HIDDEN_DIM), lambda i: (0, 0)),            # b1
        pl.BlockSpec((HIDDEN_DIM, OUT_DIM), lambda i: (0, 0)),      # W2 (grid-invariant)
        pl.BlockSpec((1, OUT_DIM), lambda i: (0, 0)),               # b2
        pl.BlockSpec((1, OUT_DIM), lambda i: (0, 0)),               # gamma
        pl.BlockSpec((1, OUT_DIM), lambda i: (0, 0)),               # beta
    ]
    out_spec = pl.BlockSpec((block_b, OUT_DIM), lambda i: (i, 0))

    cost = pl.CostEstimate(
        flops=2 * B_pad * (INPUT_DIM * HIDDEN_DIM + HIDDEN_DIM * OUT_DIM),
        transcendentals=B_pad,  # one rsqrt per row
        bytes_accessed=(x_in.size * 2 + w1b.size * 2 + w2b.size * 2
                        + (b1r.size + b2r.size + gr.size + br.size) * 4
                        + B_pad * OUT_DIM * 4),
    )

    out = pl.pallas_call(
        _decoder_kernel,
        out_shape=jax.ShapeDtypeStruct((B_pad, OUT_DIM), x.dtype),
        grid_spec=pltpu.PrefetchScalarGridSpec(
            num_scalar_prefetch=0,
            grid=grid,
            in_specs=in_specs,
            out_specs=out_spec,
        ),
        compiler_params=pltpu.CompilerParams(
            dimension_semantics=("parallel",),
            vmem_limit_bytes=32 * 1024 * 1024,
        ),
        cost_estimate=cost,
    )(x_in, w1b, b1r, w2b, b2r, gr, br)

    return out[:B] if B_pad != B else out


def _reference_bf16(x, w1, b1, w2, b2, gamma, beta):
    """Pure-JAX reference using the same bf16-matmul / f32-accumulate path."""
    xb = x.astype(jnp.bfloat16)
    h = jnp.dot(xb, w1.astype(jnp.bfloat16), preferred_element_type=jnp.float32)
    h = jnp.maximum(h + b1.reshape(1, -1), 0.0)
    y = jnp.dot(h.astype(jnp.bfloat16), w2.astype(jnp.bfloat16),
                preferred_element_type=jnp.float32) + b2.reshape(1, -1)
    mean = jnp.mean(y, axis=-1, keepdims=True)
    var = jnp.mean((y - mean) ** 2, axis=-1, keepdims=True)
    return (y - mean) * jax.lax.rsqrt(var + LN_EPS) * gamma.reshape(1, -1) + beta.reshape(1, -1)


def _reference_f32(x, w1, b1, w2, b2, gamma, beta):
    h = jnp.maximum(x @ w1 + b1.reshape(1, -1), 0.0)
    y = h @ w2 + b2.reshape(1, -1)
    mean = jnp.mean(y, axis=-1, keepdims=True)
    var = jnp.mean((y - mean) ** 2, axis=-1, keepdims=True)
    return (y - mean) / jnp.sqrt(var + LN_EPS) * gamma.reshape(1, -1) + beta.reshape(1, -1)


if __name__ == "__main__":
    key = jax.random.PRNGKey(0)
    k_x, k_w1, k_b1, k_w2, k_b2, k_x2 = jax.random.split(key, 6)

    # Deterministic synthetic parameters (uniform init similar to nn.Linear defaults).
    w1 = jax.random.uniform(k_w1, (INPUT_DIM, HIDDEN_DIM), jnp.float32,
                            -1.0 / INPUT_DIM ** 0.5, 1.0 / INPUT_DIM ** 0.5)
    b1 = jax.random.uniform(k_b1, (HIDDEN_DIM,), jnp.float32,
                            -1.0 / INPUT_DIM ** 0.5, 1.0 / INPUT_DIM ** 0.5)
    w2 = jax.random.uniform(k_w2, (HIDDEN_DIM, OUT_DIM), jnp.float32,
                            -1.0 / HIDDEN_DIM ** 0.5, 1.0 / HIDDEN_DIM ** 0.5)
    b2 = jax.random.uniform(k_b2, (OUT_DIM,), jnp.float32,
                            -1.0 / HIDDEN_DIM ** 0.5, 1.0 / HIDDEN_DIM ** 0.5)
    gamma = jnp.ones((OUT_DIM,), jnp.float32)   # LayerNorm default weight
    beta = jnp.zeros((OUT_DIM,), jnp.float32)   # LayerNorm default bias

    # --- Test 1: small batch (single small tile) ---
    B1 = 8
    x1 = jax.random.normal(k_x, (B1, INPUT_DIM), dtype=jnp.float32)
    out1 = jax.block_until_ready(
        dance_to_text_decoder_forward(x1, w1, b1, w2, b2, gamma, beta))
    ref1 = _reference_bf16(x1, w1, b1, w2, b2, gamma, beta)
    assert out1.shape == (B1, OUT_DIM)
    assert jnp.allclose(out1, ref1, atol=5e-3, rtol=5e-3), "mismatch vs bf16 reference (B=8)"
    assert jnp.max(jnp.abs(out1 - _reference_f32(x1, w1, b1, w2, b2, gamma, beta))) < 0.2

    # --- Test 2: batch not divisible by the tile (exercises padding + multi-step grid) ---
    B2 = 200
    x2 = jax.random.normal(k_x2, (B2, INPUT_DIM), dtype=jnp.float32)
    out2 = jax.block_until_ready(
        dance_to_text_decoder_forward(x2, w1, b1, w2, b2, gamma, beta, block_b=128))
    ref2 = _reference_bf16(x2, w1, b1, w2, b2, gamma, beta)
    assert out2.shape == (B2, OUT_DIM)
    assert jnp.allclose(out2, ref2, atol=5e-3, rtol=5e-3), "mismatch vs bf16 reference (B=200)"

    print("KERNEL_OK")
</pallas_src>

<mosaic_0001>
module attributes {stable_mosaic.version = 11 : i64} {
  func.func @_decoder_kernel(%arg0: i32, %arg1: memref<8x256xbf16, #tpu.memory_space<vmem>>, %arg2: memref<256x512xbf16, #tpu.memory_space<vmem>>, %arg3: memref<1x512xf32, #tpu.memory_space<vmem>>, %arg4: memref<512x768xbf16, #tpu.memory_space<vmem>>, %arg5: memref<1x768xf32, #tpu.memory_space<vmem>>, %arg6: memref<1x768xf32, #tpu.memory_space<vmem>>, %arg7: memref<1x768xf32, #tpu.memory_space<vmem>>, %arg8: memref<8x768xf32, #tpu.memory_space<vmem>>) attributes {dimension_semantics = [#tpu.dimension_semantics<parallel>], iteration_bounds = array<i64: 1>, scalar_prefetch = 0 : i64, scratch_operands = 0 : i64, tpu.core_type = #tpu.core_type<tc>, window_params = [{transform_indices = @transform_0, window_bounds = array<i64: 8, 256>}, {pipeline_mode = #tpu.pipeline_mode<synchronous>, transform_indices = @transform_1, window_bounds = array<i64: 256, 512>}, {pipeline_mode = #tpu.pipeline_mode<synchronous>, transform_indices = @transform_2, window_bounds = array<i64: 1, 512>}, {pipeline_mode = #tpu.pipeline_mode<synchronous>, transform_indices = @transform_3, window_bounds = array<i64: 512, 768>}, {pipeline_mode = #tpu.pipeline_mode<synchronous>, transform_indices = @transform_4, window_bounds = array<i64: 1, 768>}, {pipeline_mode = #tpu.pipeline_mode<synchronous>, transform_indices = @transform_5, window_bounds = array<i64: 1, 768>}, {pipeline_mode = #tpu.pipeline_mode<synchronous>, transform_indices = @transform_6, window_bounds = array<i64: 1, 768>}, {transform_indices = @transform_7, window_bounds = array<i64: 8, 768>}]} {
    %c0 = arith.constant 0 : index
    %c0_0 = arith.constant 0 : index
    %0 = vector.load %arg1[%c0, %c0_0] : memref<8x256xbf16, #tpu.memory_space<vmem>>, vector<8x256xbf16>
    %c0_1 = arith.constant 0 : index
    %c0_2 = arith.constant 0 : index
    %1 = vector.load %arg2[%c0_1, %c0_2] : memref<256x512xbf16, #tpu.memory_space<vmem>>, vector<256x512xbf16>
    %cst = arith.constant dense<0.000000e+00> : vector<8x512xf32>
    %2 = tpu.matmul %0, %1, %cst {dimension_numbers = #tpu.dot_dimension_numbers<[1], [0], [0], [1], [0, 0, 1, 1], [], []>} : vector<8x256xbf16>, vector<256x512xbf16>, vector<8x512xf32> -> vector<8x512xf32>
    %c0_3 = arith.constant 0 : index
    %c0_4 = arith.constant 0 : index
    %3 = vector.load %arg3[%c0_3, %c0_4] : memref<1x512xf32, #tpu.memory_space<vmem>>, vector<1x512xf32>
    %4 = vector.broadcast %3 : vector<1x512xf32> to vector<8x512xf32>
    %5 = arith.addf %2, %4 : vector<8x512xf32>
    %cst_5 = arith.constant 0.000000e+00 : f32
    %6 = vector.broadcast %cst_5 : f32 to vector<8x512xf32>
    %7 = arith.maximumf %5, %6 : vector<8x512xf32>
    %8 = arith.truncf %7 : vector<8x512xf32> to vector<8x512xbf16>
    %c0_6 = arith.constant 0 : index
    %c0_7 = arith.constant 0 : index
    %9 = vector.load %arg4[%c0_6, %c0_7] : memref<512x768xbf16, #tpu.memory_space<vmem>>, vector<512x768xbf16>
    %cst_8 = arith.constant dense<0.000000e+00> : vector<8x768xf32>
    %10 = tpu.matmul %8, %9, %cst_8 {dimension_numbers = #tpu.dot_dimension_numbers<[1], [0], [0], [1], [0, 0, 1, 1], [], []>} : vector<8x512xbf16>, vector<512x768xbf16>, vector<8x768xf32> -> vector<8x768xf32>
    %c0_9 = arith.constant 0 : index
    %c0_10 = arith.constant 0 : index
    %11 = vector.load %arg5[%c0_9, %c0_10] : memref<1x768xf32, #tpu.memory_space<vmem>>, vector<1x768xf32>
    %12 = vector.broadcast %11 : vector<1x768xf32> to vector<8x768xf32>
    %13 = arith.addf %10, %12 : vector<8x768xf32>
    %cst_11 = arith.constant dense<0.000000e+00> : vector<8xf32>
    %14 = vector.multi_reduction <add>, %13, %cst_11 [1] : vector<8x768xf32> to vector<8xf32>
    %15 = vector.shape_cast %14 : vector<8xf32> to vector<8x1xf32>
    %16 = arith.mulf %13, %13 : vector<8x768xf32>
    %cst_12 = arith.constant dense<0.000000e+00> : vector<8xf32>
    %17 = vector.multi_reduction <add>, %16, %cst_12 [1] : vector<8x768xf32> to vector<8xf32>
    %18 = vector.shape_cast %17 : vector<8xf32> to vector<8x1xf32>
    %cst_13 = arith.constant 0.00130208337 : f32
    %19 = vector.broadcast %cst_13 : f32 to vector<8x1xf32>
    %20 = arith.mulf %15, %19 : vector<8x1xf32>
    %cst_14 = arith.constant 0.00130208337 : f32
    %21 = vector.broadcast %cst_14 : f32 to vector<8x1xf32>
    %22 = arith.mulf %18, %21 : vector<8x1xf32>
    %23 = arith.mulf %20, %20 : vector<8x1xf32>
    %24 = arith.subf %22, %23 : vector<8x1xf32>
    %25 = vector.broadcast %20 : vector<8x1xf32> to vector<8x768xf32>
    %26 = arith.subf %13, %25 : vector<8x768xf32>
    %cst_15 = arith.constant 9.99999974E-6 : f32
    %27 = vector.broadcast %cst_15 : f32 to vector<8x1xf32>
    %28 = arith.addf %24, %27 : vector<8x1xf32>
    %29 = math.rsqrt %28 : vector<8x1xf32>
    %30 = vector.broadcast %29 : vector<8x1xf32> to vector<8x768xf32>
    %31 = arith.mulf %26, %30 : vector<8x768xf32>
    %c0_16 = arith.constant 0 : index
    %c0_17 = arith.constant 0 : index
    %32 = vector.load %arg6[%c0_16, %c0_17] : memref<1x768xf32, #tpu.memory_space<vmem>>, vector<1x768xf32>
    %33 = vector.broadcast %32 : vector<1x768xf32> to vector<8x768xf32>
    %34 = arith.mulf %31, %33 : vector<8x768xf32>
    %c0_18 = arith.constant 0 : index
    %c0_19 = arith.constant 0 : index
    %35 = vector.load %arg7[%c0_18, %c0_19] : memref<1x768xf32, #tpu.memory_space<vmem>>, vector<1x768xf32>
    %36 = vector.broadcast %35 : vector<1x768xf32> to vector<8x768xf32>
    %37 = arith.addf %34, %36 : vector<8x768xf32>
    %c0_20 = arith.constant 0 : index
    %c0_21 = arith.constant 0 : index
    %38 = vector.load %arg8[%c0_20, %c0_21] : memref<8x768xf32, #tpu.memory_space<vmem>>, vector<8x768xf32>
    tpu.vector_store %arg8[%c0_20, %c0_21], %37 {strides = array<i32>} : memref<8x768xf32, #tpu.memory_space<vmem>>, vector<8x768xf32>,
    return
  }
  func.func @transform_0(%arg0: i32) -> (i32, i32) {
    %c0_i32 = arith.constant 0 : i32
    %c0_i32_0 = arith.constant 0 : i32
    return %arg0, %c0_i32 : i32, i32
  }
  func.func @transform_1(%arg0: i32) -> (i32, i32) {
    %c0_i32 = arith.constant 0 : i32
    %c0_i32_0 = arith.constant 0 : i32
    %c0_i32_1 = arith.constant 0 : i32
    return %c0_i32, %c0_i32_0 : i32, i32
  }
  func.func @transform_2(%arg0: i32) -> (i32, i32) {
    %c0_i32 = arith.constant 0 : i32
    %c0_i32_0 = arith.constant 0 : i32
    %c0_i32_1 = arith.constant 0 : i32
    return %c0_i32, %c0_i32_0 : i32, i32
  }
  func.func @transform_3(%arg0: i32) -> (i32, i32) {
    %c0_i32 = arith.constant 0 : i32
    %c0_i32_0 = arith.constant 0 : i32
    %c0_i32_1 = arith.constant 0 : i32
    return %c0_i32, %c0_i32_0 : i32, i32
  }
  func.func @transform_4(%arg0: i32) -> (i32, i32) {
    %c0_i32 = arith.constant 0 : i32
    %c0_i32_0 = arith.constant 0 : i32
    %c0_i32_1 = arith.constant 0 : i32
    return %c0_i32, %c0_i32_0 : i32, i32
  }
  func.func @transform_5(%arg0: i32) -> (i32, i32) {
    %c0_i32 = arith.constant 0 : i32
    %c0_i32_0 = arith.constant 0 : i32
    %c0_i32_1 = arith.constant 0 : i32
    return %c0_i32, %c0_i32_0 : i32, i32
  }
  func.func @transform_6(%arg0: i32) -> (i32, i32) {
    %c0_i32 = arith.constant 0 : i32
    %c0_i32_0 = arith.constant 0 : i32
    %c0_i32_1 = arith.constant 0 : i32
    return %c0_i32, %c0_i32_0 : i32, i32
  }
  func.func @transform_7(%arg0: i32) -> (i32, i32) {
    %c0_i32 = arith.constant 0 : i32
    %c0_i32_0 = arith.constant 0 : i32
    return %arg0, %c0_i32 : i32, i32
  }
}

</mosaic_0001>

<bundles_post_ra>
// kernel: tpu_custom_call.1
= control target key start
LH: loop header
LB: loop body
LE: loop exit
PB: predicated region body
PF: predicated region fallthrough
CT: control target
= control target key end

     0   :  { %12 = vsyncpa [#allocation3], 0  ;;  %s3134_s0 = inlined_call_operand.hbm [shape: bf16[8,256], index: 0, kind: input, shape index: {}]   ;;  %s3135_s1 = inlined_call_operand.hbm [shape: bf16[256,512], index: 1, kind: input, shape index: {}]   ;;  %s3136_s2 = inlined_call_operand.hbm [shape: f32[1,512], index: 2, kind: input, shape index: {}]   ;;  %s3137_s3 = inlined_call_operand.hbm [shape: bf16[512,768], index: 3, kind: input, shape index: {}]   ;;  %s3138_s4 = inlined_call_operand.vmem [shape: f32[1,768], index: 4, kind: input, shape index: {}]   ;;  %s3139_s5 = inlined_call_operand.vmem [shape: f32[1,768], index: 5, kind: input, shape index: {}]   ;;  %s3140_s6 = inlined_call_operand.vmem [shape: f32[1,768], index: 6, kind: input, shape index: {}]   ;;  %s3141_s7 = inlined_call_operand.hbm [shape: f32[8,768], index: 7, kind: output, shape index: {}]  }
   0x1   :  { %13 = vsyncpa [#allocation6], 0 }
   0x2   :  { %14 = vsyncpa [#allocation9], 0 }
   0x3   :  { %15 = vsyncpa [#allocation4], 0  ;;  %s2940_s24 = smov [#allocation5]   ;;  %s2822_s28 = scalar_lea.hbm %s3135_s1, 8192 }
   0x4   :  { %s31_s25 = sshll.u32 %s2940_s24, 4  ;;  %p2823_p0 = scmp.ne.s32.totalorder %s3135_s1, %s2822_s28  ;;  %s32_s25 = int_to_ptr.vmem [resolvable:$true] %s31_s25 }
   0x5   :  { %p2826_p1 = scmp.lt.u32.totalorder %s2822_s28, %s3135_s1 }
   0x7   :  { %p2828_p2 = pnand %p2826_p1, %p2823_p0 }
   0x9   :  { %2831 = shalt.err (!%p2828_p2)
}
   0xa   :  { %s2832_s10 = scalar_lea.vmem %s32_s25, 8192  ;;  %p2837_p4 = scmp.lt.s32.totalorder %s32_s25, %s32_s25 }
   0xb   :  { %p2833_p3 = scmp.ne.s32.totalorder %s32_s25, %s2832_s10  ;;  %p2838_p5 = scmp.lt.s32.totalorder %s2832_s10, %s2832_s10 }
   0xd   :  { %p2839_p6 = por %p2838_p5, %p2837_p4 }
   0xf   :  { %p2840_p7 = pnand %p2839_p6, %p2833_p3 }
  0x11   :  { %2843 = shalt.err (!%p2840_p7)
}
  0x12   :  { %s2941_s11 = smov 256   ;;  %s2942_s12 = smov 16  }
  0x13   :  { %37 = dma.hbm_to_vmem [thread:$0]  %s3135_s1, 8192, %s32_s25, [#allocation6], %s2941_s11, %s2941_s11, %s2942_s12  }
  0x14   :  { %s2943_s15 = smov [#allocation2]   ;;  %s2944_s17 = smov [#allocation7]  }
  0x15   :  { %s22_s16 = sshll.u32 %s2943_s15, 4  ;;  %s44_s18 = sshll.u32 %s2944_s17, 4  ;;  %s23_s16 = int_to_ptr.vmem [resolvable:$true] %s22_s16  ;;  %s45_s18 = int_to_ptr.vmem [resolvable:$true] %s44_s18 }
  0x16   :  { %s2844_s21 = scalar_lea.hbm %s3134_s0, 128 }
  0x17   :  { %p2845_p8 = scmp.ne.s32.totalorder %s3134_s0, %s2844_s21  ;;  %p2848_p9 = scmp.lt.u32.totalorder %s2844_s21, %s3134_s0 }
  0x19   :  { %p2850_p10 = pnand %p2848_p9, %p2845_p8 }
  0x1b   :  { %2853 = shalt.err (!%p2850_p10)
}
  0x1c   :  { %s2854_s1 = scalar_lea.vmem %s23_s16, 128  ;;  %p2859_p12 = scmp.lt.s32.totalorder %s23_s16, %s23_s16 }
  0x1d   :  { %p2855_p11 = scmp.ne.s32.totalorder %s23_s16, %s2854_s1  ;;  %p2860_p13 = scmp.lt.s32.totalorder %s2854_s1, %s2854_s1 }
  0x1f   :  { %p2861_p0 = por %p2860_p13, %p2859_p12 }
  0x21   :  { %p2862_p1 = pnand %p2861_p0, %p2855_p11 }
  0x23   :  { %2865 = shalt.err (!%p2862_p1)
}
  0x24   :  { %25 = dma.hbm_to_vmem [thread:$0]  %s3134_s0, 128, %s23_s16, [#allocation3]  }
  0x25   :  { %s2866_s30 = scalar_lea.hbm %s3136_s2, 64 }
  0x26   :  { %p2867_p2 = scmp.ne.s32.totalorder %s3136_s2, %s2866_s30  ;;  %p2870_p3 = scmp.lt.u32.totalorder %s2866_s30, %s3136_s2 }
  0x28   :  { %p2872_p4 = pnand %p2870_p3, %p2867_p2 }
  0x2a   :  { %2875 = shalt.err (!%p2872_p4)
}
  0x2b   :  { %s2876_s12 = scalar_lea.vmem %s45_s18, 64  ;;  %p2881_p6 = scmp.lt.s32.totalorder %s45_s18, %s45_s18 }
  0x2c   :  { %p2877_p5 = scmp.ne.s32.totalorder %s45_s18, %s2876_s12  ;;  %p2882_p7 = scmp.lt.s32.totalorder %s2876_s12, %s2876_s12 }
  0x2e   :  { %p2883_p8 = por %p2882_p7, %p2881_p6 }
  0x30   :  { %p2884_p9 = pnand %p2883_p8, %p2877_p5 }
  0x32   :  { %2887 = shalt.err (!%p2884_p9)
}
  0x33   :  { %47 = dma.hbm_to_vmem [thread:$0]  %s3136_s2, 64, %s45_s18, [#allocation6]  }
  0x34   :  { %s2945_s14 = smov [#allocation8]   ;;  %s2888_s19 = scalar_lea.hbm %s3137_s3, 24576 }
  0x35   :  { %s53_s15 = sshll.u32 %s2945_s14, 4  ;;  %p2889_p10 = scmp.ne.s32.totalorder %s3137_s3, %s2888_s19  ;;  %s54_s15 = int_to_ptr.vmem [resolvable:$true] %s53_s15 }
  0x36   :  { %p2892_p11 = scmp.lt.u32.totalorder %s2888_s19, %s3137_s3 }
  0x38   :  { %p2894_p12 = pnand %p2892_p11, %p2889_p10 }
  0x3a   :  { %2897 = shalt.err (!%p2894_p12)
}
  0x3b   :  { %s2898_s24 = scalar_lea.vmem %s54_s15, 24576  ;;  %p2903_p0 = scmp.lt.s32.totalorder %s54_s15, %s54_s15 }
  0x3c   :  { %p2899_p13 = scmp.ne.s32.totalorder %s54_s15, %s2898_s24  ;;  %p2904_p1 = scmp.lt.s32.totalorder %s2898_s24, %s2898_s24 }
  0x3e   :  { %p2905_p2 = por %p2904_p1, %p2903_p0 }
  0x40   :  { %p2906_p3 = pnand %p2905_p2, %p2899_p13 }
  0x42   :  { %2909 = shalt.err (!%p2906_p3)
}
  0x43   :  { %s2946_s2 = smov 384   ;;  %s2947_s18 = smov 24  }
  0x44   :  { %59 = dma.hbm_to_vmem [thread:$0]  %s3137_s3, 24576, %s54_s15, [#allocation9], %s2946_s2, %s2946_s2, %s2947_s18  }
  0x45   :  { %2932 = dma.done.wait [#allocation3], 128  }
  0x46   :  { %2933 = vsyncadd [#allocation3], 4294967168 }
  0x47   :  { %2934 = dma.done.wait [#allocation6], 8256  }
  0x48   :  { %2935 = vsyncadd [#allocation6], 4294959040 }
  0x49   :  { %2936 = dma.done.wait [#allocation9], 24576  }
  0x4a   :  { %2937 = vsyncadd [#allocation9], 4294942720  ;;  %v2434_v0 = vld [vmem:[#allocation5 + $0x4] ss:$16 sps:$4 sm:$0xff]   ;;  %v2436_v1 = vld [vmem:[#allocation5] ss:$16 sps:$4 sm:$0xff]  }
  0x4b   :  { %492 = vmatprep.subr.bf16.mxu1 %v2434_v0  ;;  %v2437_v2 = vld [vmem:[#allocation5 + $0x24] ss:$16 sps:$4 sm:$0xff]   ;;  %v2439_v3 = vld [vmem:[#allocation5 + $0x20] ss:$16 sps:$4 sm:$0xff]   ;;  %v78_v13 = vld [vmem:[#allocation2] sm:$0xff] }
  0x4c   :  { %493 = vmatpush1.bf16.msra.mxu1 %v2436_v1  ;;  %v2440_v4 = vld [vmem:[#allocation5 + $0x44] ss:$16 sps:$4 sm:$0xff]   ;;  %v2442_v5 = vld [vmem:[#allocation5 + $0x40] ss:$16 sps:$4 sm:$0xff]   ;;  %v3037_v14 = vcombine.high %v78_v13, %v78_v13  ;;  %v2486_v45 = vld [vmem:[#allocation5 + $0xc] ss:$16 sps:$4 sm:$0xff]   ;;  %v3040_v46 = vcombine.low %v78_v13, %v78_v13 }
  0x4d   :  { %494 = vmatprep.subr.bf16.mxu1 %v2437_v2  ;;  %v2443_v6 = vld [vmem:[#allocation5 + $0x64] ss:$16 sps:$4 sm:$0xff]   ;;  %v2445_v7 = vld [vmem:[#allocation5 + $0x60] ss:$16 sps:$4 sm:$0xff]   ;;  %v2484_v47 = vld [vmem:[#allocation5 + $0x8] ss:$16 sps:$4 sm:$0xff]  }
  0x4e   :  { %v2446_v8 = vld [vmem:[#allocation5 + $0x84] ss:$16 sps:$4 sm:$0xff]   ;;  %v2448_v9 = vld [vmem:[#allocation5 + $0x80] ss:$16 sps:$4 sm:$0xff]   ;;  %524 = vmatprep.mubr.bf16.mxu1 %v3037_v14  ;;  %v2489_v49 = vld [vmem:[#allocation5 + $0x2c] ss:$16 sps:$4 sm:$0xff]  }
  0x4f   :  { %v2449_v10 = vld [vmem:[#allocation5 + $0xa4] ss:$16 sps:$4 sm:$0xff]   ;;  %v2451_v11 = vld [vmem:[#allocation5 + $0xa0] ss:$16 sps:$4 sm:$0xff]   ;;  %v2487_v51 = vld [vmem:[#allocation5 + $0x28] ss:$16 sps:$4 sm:$0xff]  }
  0x50   :  { %495 = vmatpush1.bf16.msra.mxu1 %v2439_v3  ;;  %v2452_v12 = vld [vmem:[#allocation5 + $0xc4] ss:$16 sps:$4 sm:$0xff]   ;;  %v2454_v15 = vld [vmem:[#allocation5 + $0xc0] ss:$16 sps:$4 sm:$0xff]   ;;  %v2492_v54 = vld [vmem:[#allocation5 + $0x4c] ss:$16 sps:$4 sm:$0xff]  }
  0x51   :  { %496 = vmatprep.subr.bf16.mxu1 %v2440_v4  ;;  %v2455_v16 = vld [vmem:[#allocation5 + $0xe4] ss:$16 sps:$4 sm:$0xff]   ;;  %v2457_v17 = vld [vmem:[#allocation5 + $0xe0] ss:$16 sps:$4 sm:$0xff]   ;;  %v2490_v55 = vld [vmem:[#allocation5 + $0x48] ss:$16 sps:$4 sm:$0xff]  }
  0x52   :  { %v2458_v18 = vld [vmem:[#allocation5 + $0x104] ss:$16 sps:$4 sm:$0xff]   ;;  %v2460_v19 = vld [vmem:[#allocation5 + $0x100] ss:$16 sps:$4 sm:$0xff]   ;;  %v2495_v58 = vld [vmem:[#allocation5 + $0x6c] ss:$16 sps:$4 sm:$0xff]  }
  0x53   :  { %v2461_v20 = vld [vmem:[#allocation5 + $0x124] ss:$16 sps:$4 sm:$0xff]   ;;  %v2463_v21 = vld [vmem:[#allocation5 + $0x120] ss:$16 sps:$4 sm:$0xff]   ;;  %v2493_v59 = vld [vmem:[#allocation5 + $0x68] ss:$16 sps:$4 sm:$0xff]  }
  0x54   :  { %497 = vmatpush1.bf16.msra.mxu1 %v2442_v5  ;;  %v2464_v22 = vld [vmem:[#allocation5 + $0x144] ss:$16 sps:$4 sm:$0xff]   ;;  %v2466_v23 = vld [vmem:[#allocation5 + $0x140] ss:$16 sps:$4 sm:$0xff]   ;;  %v2498_v62 = vld [vmem:[#allocation5 + $0x8c] ss:$16 sps:$4 sm:$0xff]  }
  0x55   :  { %498 = vmatprep.subr.bf16.mxu1 %v2443_v6  ;;  %v2467_v24 = vld [vmem:[#allocation5 + $0x164] ss:$16 sps:$4 sm:$0xff]   ;;  %v2469_v25 = vld [vmem:[#allocation5 + $0x160] ss:$16 sps:$4 sm:$0xff]   ;;  %v2496_v63 = vld [vmem:[#allocation5 + $0x88] ss:$16 sps:$4 sm:$0xff]  }
  0x56   :  { %v2470_v26 = vld [vmem:[#allocation5 + $0x184] ss:$16 sps:$4 sm:$0xff]   ;;  %v2532_v27 = vld [vmem:[#allocation8 + $0x4] ss:$24 sps:$4 sm:$0xff]   ;;  %v2538_v29 = vld [vmem:[#allocation8 + $0x34] ss:$24 sps:$4 sm:$0xff]  }
  0x57   :  { %v2534_v28 = vld [vmem:[#allocation8] ss:$24 sps:$4 sm:$0xff]   ;;  %1766 = vmatprep.subr.bf16.mxu0 %v2532_v27  ;;  %v2540_v30 = vld [vmem:[#allocation8 + $0x30] ss:$24 sps:$4 sm:$0xff]   ;;  %v2472_v31 = vld [vmem:[#allocation5 + $0x180] ss:$16 sps:$4 sm:$0xff]  }
  0x58   :  { %499 = vmatpush1.bf16.msra.mxu1 %v2445_v7  ;;  %1767 = vmatpush1.bf16.msra.mxu0 %v2534_v28  ;;  %v2473_v32 = vld [vmem:[#allocation5 + $0x1a4] ss:$16 sps:$4 sm:$0xff]   ;;  %v2544_v33 = vld [vmem:[#allocation8 + $0x64] ss:$24 sps:$4 sm:$0xff]   ;;  %v2550_v36 = vld [vmem:[#allocation8 + $0x94] ss:$24 sps:$4 sm:$0xff]  }
  0x59   :  { %500 = vmatprep.subr.bf16.mxu1 %v2446_v8  ;;  %1768 = vmatprep.subr.bf16.mxu0 %v2538_v29  ;;  %v2475_v34 = vld [vmem:[#allocation5 + $0x1a0] ss:$16 sps:$4 sm:$0xff]   ;;  %v2546_v35 = vld [vmem:[#allocation8 + $0x60] ss:$24 sps:$4 sm:$0xff]   ;;  %v2552_v39 = vld [vmem:[#allocation8 + $0x90] ss:$24 sps:$4 sm:$0xff]  }
  0x5a   :  { %v2476_v37 = vld [vmem:[#allocation5 + $0x1c4] ss:$16 sps:$4 sm:$0xff]   ;;  %v2478_v38 = vld [vmem:[#allocation5 + $0x1c0] ss:$16 sps:$4 sm:$0xff]   ;;  %v2501_v2 = vld [vmem:[#allocation5 + $0xac] ss:$16 sps:$4 sm:$0xff]  }
  0x5b   :  { %v2556_v40 = vld [vmem:[#allocation8 + $0xc4] ss:$24 sps:$4 sm:$0xff]   ;;  %v2479_v41 = vld [vmem:[#allocation5 + $0x1e4] ss:$16 sps:$4 sm:$0xff]   ;;  %v2562_v44 = vld [vmem:[#allocation8 + $0xf4] ss:$24 sps:$4 sm:$0xff]  }
  0x5c   :  { %501 = vmatpush1.bf16.msra.mxu1 %v2448_v9  ;;  %1769 = vmatpush1.bf16.msra.mxu0 %v2540_v30  ;;  %v2481_v42 = vld [vmem:[#allocation5 + $0x1e0] ss:$16 sps:$4 sm:$0xff]   ;;  %v2558_v43 = vld [vmem:[#allocation8 + $0xc0] ss:$24 sps:$4 sm:$0xff]   ;;  %v2564_v48 = vld [vmem:[#allocation8 + $0xf0] ss:$24 sps:$4 sm:$0xff]  }
  0x5d   :  { %502 = vmatprep.subr.bf16.mxu1 %v2449_v10  ;;  %1770 = vmatprep.subr.bf16.mxu0 %v2544_v33  ;;  %v2568_v50 = vld [vmem:[#allocation8 + $0x124] ss:$24 sps:$4 sm:$0xff]   ;;  %v2570_v52 = vld [vmem:[#allocation8 + $0x120] ss:$24 sps:$4 sm:$0xff]   ;;  %v2574_v53 = vld [vmem:[#allocation8 + $0x154] ss:$24 sps:$4 sm:$0xff]  }
  0x5e   :  { %v2576_v56 = vld [vmem:[#allocation8 + $0x150] ss:$24 sps:$4 sm:$0xff]   ;;  %v2580_v57 = vld [vmem:[#allocation8 + $0x184] ss:$24 sps:$4 sm:$0xff]   ;;  %v2582_v60 = vld [vmem:[#allocation8 + $0x180] ss:$24 sps:$4 sm:$0xff]  }
  0x5f   :  { %v2586_v61 = vld [vmem:[#allocation8 + $0x1b4] ss:$24 sps:$4 sm:$0xff]   ;;  %v2588_v0 = vld [vmem:[#allocation8 + $0x1b0] ss:$24 sps:$4 sm:$0xff]   ;;  %v2592_v1 = vld [vmem:[#allocation8 + $0x1e4] ss:$24 sps:$4 sm:$0xff]  }
  0x60   :  { %503 = vmatpush1.bf16.msra.mxu1 %v2451_v11  ;;  %1771 = vmatpush1.bf16.msra.mxu0 %v2546_v35  ;;  %v2594_v3 = vld [vmem:[#allocation8 + $0x1e0] ss:$24 sps:$4 sm:$0xff]   ;;  %v2499_v4 = vld [vmem:[#allocation5 + $0xa8] ss:$16 sps:$4 sm:$0xff]   ;;  %v2600_v7 = vld [vmem:[#allocation8 + $0x210] ss:$24 sps:$4 sm:$0xff]  }
  0x61   :  { %504 = vmatprep.subr.bf16.mxu1 %v2452_v12  ;;  %1772 = vmatprep.subr.bf16.mxu0 %v2550_v36  ;;  %v2598_v5 = vld [vmem:[#allocation8 + $0x214] ss:$24 sps:$4 sm:$0xff]   ;;  %v2504_v6 = vld [vmem:[#allocation5 + $0xcc] ss:$16 sps:$4 sm:$0xff]   ;;  %v2604_v9 = vld [vmem:[#allocation8 + $0x244] ss:$24 sps:$4 sm:$0xff]  }
  0x62   :  { %v2502_v8 = vld [vmem:[#allocation5 + $0xc8] ss:$16 sps:$4 sm:$0xff]   ;;  %v2507_v10 = vld [vmem:[#allocation5 + $0xec] ss:$16 sps:$4 sm:$0xff]  }
  0x63   :  { %v2606_v11 = vld [vmem:[#allocation8 + $0x240] ss:$24 sps:$4 sm:$0xff]   ;;  %v2505_v12 = vld [vmem:[#allocation5 + $0xe8] ss:$16 sps:$4 sm:$0xff]  }
  0x64   :  { %505 = vmatpush1.bf16.msra.mxu1 %v2454_v15  ;;  %1773 = vmatpush1.bf16.msra.mxu0 %v2552_v39  ;;  %v2610_v13 = vld [vmem:[#allocation8 + $0x274] ss:$24 sps:$4 sm:$0xff]   ;;  %v2612_v15 = vld [vmem:[#allocation8 + $0x270] ss:$24 sps:$4 sm:$0xff]  }
  0x65   :  { %506 = vmatprep.subr.bf16.mxu1 %v2455_v16  ;;  %1774 = vmatprep.subr.bf16.mxu0 %v2556_v40  ;;  %v2508_v16 = vld [vmem:[#allocation5 + $0x108] ss:$16 sps:$4 sm:$0xff]   ;;  %v2528_v27 = vld [vmem:[#allocation5 + $0x1cc] ss:$16 sps:$4 sm:$0xff]  }
  0x66   :  { %v2526_v28 = vld [vmem:[#allocation5 + $0x1c8] ss:$16 sps:$4 sm:$0xff]   ;;  %v2531_v29 = vld [vmem:[#allocation5 + $0x1ec] ss:$16 sps:$4 sm:$0xff]  }
  0x67   :  { %v2529_v30 = vld [vmem:[#allocation5 + $0x1e8] ss:$16 sps:$4 sm:$0xff]   ;;  %v2547_v36 = vld [vmem:[#allocation8 + $0x68] ss:$24 sps:$4 sm:$0xff]  }
  0x68   :  { %507 = vmatpush1.bf16.msra.mxu1 %v2457_v17  ;;  %1775 = vmatpush1.bf16.msra.mxu0 %v2558_v43  ;;  %v2513_v17 = vld [vmem:[#allocation5 + $0x12c] ss:$16 sps:$4 sm:$0xff]   ;;  %v2543_v33 = vld [vmem:[#allocation8 + $0x3c] ss:$24 sps:$4 sm:$0xff]   ;;  %v2549_v35 = vld [vmem:[#allocation8 + $0x6c] ss:$24 sps:$4 sm:$0xff]  }
  0x69   :  { %508 = vmatprep.subr.bf16.mxu1 %v2458_v18  ;;  %1776 = vmatprep.subr.bf16.mxu0 %v2562_v44  ;;  %v2511_v18 = vld [vmem:[#allocation5 + $0x128] ss:$16 sps:$4 sm:$0xff]   ;;  %v2559_v40 = vld [vmem:[#allocation8 + $0xc8] ss:$24 sps:$4 sm:$0xff]  }
  0x6a   :  { %v2561_v39 = vld [vmem:[#allocation8 + $0xcc] ss:$24 sps:$4 sm:$0xff]  }
  0x6b   :  { %v2616_v43 = vld [vmem:[#allocation8 + $0x2a4] ss:$24 sps:$4 sm:$0xff]  }
  0x6c   :  { %509 = vmatpush1.bf16.msra.mxu1 %v2460_v19  ;;  %1777 = vmatpush1.bf16.msra.mxu0 %v2564_v48  ;;  %v2516_v19 = vld [vmem:[#allocation5 + $0x14c] ss:$16 sps:$4 sm:$0xff]   ;;  %v2573_v44 = vld [vmem:[#allocation8 + $0x12c] ss:$24 sps:$4 sm:$0xff]   ;;  %v2579_v48 = vld [vmem:[#allocation8 + $0x15c] ss:$24 sps:$4 sm:$0xff]  }
  0x6d   :  { %510 = vmatprep.subr.bf16.mxu1 %v2461_v20  ;;  %1778 = vmatprep.subr.bf16.mxu0 %v2568_v50  ;;  %v2514_v20 = vld [vmem:[#allocation5 + $0x148] ss:$16 sps:$4 sm:$0xff]   ;;  %v2577_v50 = vld [vmem:[#allocation8 + $0x158] ss:$24 sps:$4 sm:$0xff]  }
  0x70   :  { %511 = vmatpush1.bf16.msra.mxu1 %v2463_v21  ;;  %1779 = vmatpush1.bf16.msra.mxu0 %v2570_v52  ;;  %v2519_v21 = vld [vmem:[#allocation5 + $0x16c] ss:$16 sps:$4 sm:$0xff]   ;;  %v2585_v52 = vld [vmem:[#allocation8 + $0x18c] ss:$24 sps:$4 sm:$0xff]  }
  0x71   :  { %512 = vmatprep.subr.bf16.mxu1 %v2464_v22  ;;  %1780 = vmatprep.subr.bf16.mxu0 %v2574_v53  ;;  %v2517_v22 = vld [vmem:[#allocation5 + $0x168] ss:$16 sps:$4 sm:$0xff]   ;;  %v2583_v53 = vld [vmem:[#allocation8 + $0x188] ss:$24 sps:$4 sm:$0xff]  }
  0x74   :  { %513 = vmatpush1.bf16.msra.mxu1 %v2466_v23  ;;  %1781 = vmatpush1.bf16.msra.mxu0 %v2576_v56  ;;  %v2522_v23 = vld [vmem:[#allocation5 + $0x18c] ss:$16 sps:$4 sm:$0xff]   ;;  %v2597_v56 = vld [vmem:[#allocation8 + $0x1ec] ss:$24 sps:$4 sm:$0xff]  }
  0x75   :  { %514 = vmatprep.subr.bf16.mxu1 %v2467_v24  ;;  %1782 = vmatprep.subr.bf16.mxu0 %v2580_v57  ;;  %v2520_v24 = vld [vmem:[#allocation5 + $0x188] ss:$16 sps:$4 sm:$0xff]   ;;  %v2595_v57 = vld [vmem:[#allocation8 + $0x1e8] ss:$24 sps:$4 sm:$0xff]  }
  0x78   :  { %515 = vmatpush1.bf16.msra.mxu1 %v2469_v25  ;;  %1783 = vmatpush1.bf16.msra.mxu0 %v2582_v60  ;;  %v2525_v25 = vld [vmem:[#allocation5 + $0x1ac] ss:$16 sps:$4 sm:$0xff]   ;;  %v2609_v60 = vld [vmem:[#allocation8 + $0x24c] ss:$24 sps:$4 sm:$0xff]  }
  0x79   :  { %516 = vmatprep.subr.bf16.mxu1 %v2470_v26  ;;  %1784 = vmatprep.subr.bf16.mxu0 %v2586_v61  ;;  %v2523_v26 = vld [vmem:[#allocation5 + $0x1a8] ss:$16 sps:$4 sm:$0xff]   ;;  %v2607_v61 = vld [vmem:[#allocation8 + $0x248] ss:$24 sps:$4 sm:$0xff]  }
  0x7c   :  { %517 = vmatpush1.bf16.msra.mxu1 %v2472_v31  ;;  %1785 = vmatpush1.bf16.msra.mxu0 %v2588_v0  ;;  %v2537_v31 = vld [vmem:[#allocation8 + $0xc] ss:$24 sps:$4 sm:$0xff]  }
  0x7d   :  { %518 = vmatprep.subr.bf16.mxu1 %v2473_v32  ;;  %1786 = vmatprep.subr.bf16.mxu0 %v2592_v1  ;;  %v2535_v32 = vld [vmem:[#allocation8 + $0x8] ss:$24 sps:$4 sm:$0xff]   ;;  %v2621_v0 = vld [vmem:[#allocation8 + $0x2ac] ss:$24 sps:$4 sm:$0xff]  }
  0x7e   :  { %v2619_v1 = vld [vmem:[#allocation8 + $0x2a8] ss:$24 sps:$4 sm:$0xff]  }
  0x80   :  { %519 = vmatpush1.bf16.msra.mxu1 %v2475_v34  ;;  %1787 = vmatpush1.bf16.msra.mxu0 %v2594_v3  ;;  %v2541_v34 = vld [vmem:[#allocation8 + $0x38] ss:$24 sps:$4 sm:$0xff]  }
  0x81   :  { %520 = vmatprep.subr.bf16.mxu1 %v2476_v37  ;;  %1788 = vmatprep.subr.bf16.mxu0 %v2598_v5  ;;  %v2555_v37 = vld [vmem:[#allocation8 + $0x9c] ss:$24 sps:$4 sm:$0xff]   ;;  %v2625_v3 = vld [vmem:[#allocation8 + $0x2d8] ss:$24 sps:$4 sm:$0xff]   ;;  %v145_v5 = vlaneseq }
  0x84   :  { %521 = vmatpush1.bf16.msra.mxu1 %v2478_v38  ;;  %1789 = vmatpush1.bf16.msra.mxu0 %v2600_v7  ;;  %v2553_v38 = vld [vmem:[#allocation8 + $0x98] ss:$24 sps:$4 sm:$0xff]  }
  0x85   :  { %522 = vmatprep.subr.bf16.mxu1 %v2479_v41  ;;  %1790 = vmatprep.subr.bf16.mxu0 %v2604_v9  ;;  %v2567_v41 = vld [vmem:[#allocation8 + $0xfc] ss:$24 sps:$4 sm:$0xff]  }
  0x88   :  { %523 = vmatpush1.bf16.msra.mxu1 %v2481_v42  ;;  %1791 = vmatpush1.bf16.msra.mxu0 %v2606_v11  ;;  %v2565_v42 = vld [vmem:[#allocation8 + $0xf8] ss:$24 sps:$4 sm:$0xff]  }
  0x89   :  { %533 = vmatprep.subr.bf16.mxu1 %v2486_v45  ;;  %1792 = vmatprep.subr.bf16.mxu0 %v2610_v13  ;;  %v2618_v45 = vld [vmem:[#allocation8 + $0x2a0] ss:$24 sps:$4 sm:$0xff]  }
  0x8b   :  { %525 = vmatmul.mubr.bf16.vlgmr.msra.gmra.mrb[0].mxu1 %v3040_v46 }
  0x8c   :  { %534 = vmatpush1.bf16.msra.mxu1 %v2484_v47  ;;  %565 = vmatprep.mubr.bf16.mxu1 %v3037_v14  ;;  %v2510_v14 = vld [vmem:[#allocation5 + $0x10c] ss:$16 sps:$4 sm:$0xff]   ;;  %v2622_v47 = vld [vmem:[#allocation8 + $0x2d4] ss:$24 sps:$4 sm:$0xff]  }
  0x8d   :  { %535 = vmatprep.subr.bf16.mxu1 %v2489_v49  ;;  %1793 = vmatpush1.bf16.msra.mxu0 %v2612_v15  ;;  %v2624_v49 = vld [vmem:[#allocation8 + $0x2d0] ss:$24 sps:$4 sm:$0xff]  }
  0x8e   :  { %1794 = vmatprep.subr.bf16.mxu0 %v2616_v43  ;;  %v2661_v43 = vld [vmem:[#allocation8 + $0x3f8] ss:$24 sps:$4 sm:$0xff]  }
  0x90   :  { %536 = vmatpush1.bf16.msra.mxu1 %v2487_v51  ;;  %v2630_v51 = vld [vmem:[#allocation8 + $0x304] ss:$24 sps:$4 sm:$0xff]  }
  0x91   :  { %537 = vmatprep.subr.bf16.mxu1 %v2492_v54  ;;  %1795 = vmatpush1.bf16.msra.mxu0 %v2618_v45  ;;  %v2591_v54 = vld [vmem:[#allocation8 + $0x1bc] ss:$24 sps:$4 sm:$0xff]   ;;  %v2669_v45 = vld [vmem:[#allocation8 + $0x42c] ss:$24 sps:$4 sm:$0xff]  }
  0x92   :  { %1796 = vmatprep.subr.bf16.mxu0 %v2622_v47  ;;  %v2667_v47 = vld [vmem:[#allocation8 + $0x428] ss:$24 sps:$4 sm:$0xff]  }
  0x94   :  { %538 = vmatpush1.bf16.msra.mxu1 %v2490_v55  ;;  %v2589_v55 = vld [vmem:[#allocation8 + $0x1b8] ss:$24 sps:$4 sm:$0xff]  }
  0x95   :  { %539 = vmatprep.subr.bf16.mxu1 %v2495_v58  ;;  %1797 = vmatpush1.bf16.msra.mxu0 %v2624_v49  ;;  %v2603_v58 = vld [vmem:[#allocation8 + $0x21c] ss:$24 sps:$4 sm:$0xff]  }
  0x96   :  { %1807 = vmatprep.subr.bf16.mxu0 %v2630_v51  ;;  %v2675_v49 = vld [vmem:[#allocation8 + $0x45c] ss:$24 sps:$4 sm:$0xff]   ;;  %v2673_v51 = vld [vmem:[#allocation8 + $0x458] ss:$24 sps:$4 sm:$0xff]  }
  0x98   :  { %540 = vmatpush1.bf16.msra.mxu1 %v2493_v59  ;;  %v2601_v59 = vld [vmem:[#allocation8 + $0x218] ss:$24 sps:$4 sm:$0xff]  }
  0x99   :  { %541 = vmatprep.subr.bf16.mxu1 %v2498_v62  ;;  %v2615_v62 = vld [vmem:[#allocation8 + $0x27c] ss:$24 sps:$4 sm:$0xff]  }
  0x9c   :  { %542 = vmatpush1.bf16.msra.mxu1 %v2496_v63  ;;  %v2613_v63 = vld [vmem:[#allocation8 + $0x278] ss:$24 sps:$4 sm:$0xff]  }
  0x9d   :  { %543 = vmatprep.subr.bf16.mxu1 %v2501_v2  ;;  %v2627_v2 = vld [vmem:[#allocation8 + $0x2dc] ss:$24 sps:$4 sm:$0xff]  }
  0xa0   :  { %544 = vmatpush1.bf16.msra.mxu1 %v2499_v4  ;;  %v2633_v4 = vld [vmem:[#allocation8 + $0x30c] ss:$24 sps:$4 sm:$0xff]  }
  0xa1   :  { %545 = vmatprep.subr.bf16.mxu1 %v2504_v6  ;;  %v3045_v6 = vshrl.u32 %v145_v5, 7  ;;  %v2705_v5 = vld [vmem:[#allocation8 + $0x54c] ss:$24 sps:$4 sm:$0xff]  }
  0xa3   :  { %v3048_v7 = vsub.s32 0, %v3045_v6  ;;  %v3053_v9 = vsub.s32 1, %v3045_v6 }
  0xa4   :  { %546 = vmatpush1.bf16.msra.mxu1 %v2502_v8  ;;  %v3050_v8 = vld [vmem:[#allocation7] sm:$0xf] }
  0xa5   :  { %547 = vmatprep.subr.bf16.mxu1 %v2507_v10  ;;  %v148_v10 = vrot.slane %v3050_v8, %v3048_v7  ;;  %v152_v11 = vrot.slane %v3050_v8, %v3053_v9 }
  0xa8   :  { %548 = vmatpush1.bf16.msra.mxu1 %v2505_v12 }
  0xa9   :  { %549 = vmatprep.subr.bf16.mxu1 %v2510_v14 }
  0xac   :  { %550 = vmatpush1.bf16.msra.mxu1 %v2508_v16 }
  0xad   :  { %551 = vmatprep.subr.bf16.mxu1 %v2513_v17 }
  0xb0   :  { %552 = vmatpush1.bf16.msra.mxu1 %v2511_v18 }
  0xb1   :  { %553 = vmatprep.subr.bf16.mxu1 %v2516_v19 }
  0xb4   :  { %554 = vmatpush1.bf16.msra.mxu1 %v2514_v20 }
  0xb5   :  { %555 = vmatprep.subr.bf16.mxu1 %v2519_v21  ;;  %v2628_v21 = vld [vmem:[#allocation8 + $0x300] ss:$24 sps:$4 sm:$0xff]  }
  0xb8   :  { %556 = vmatpush1.bf16.msra.mxu1 %v2517_v22  ;;  %v2631_v22 = vld [vmem:[#allocation8 + $0x308] ss:$24 sps:$4 sm:$0xff]  }
  0xb9   :  { %557 = vmatprep.subr.bf16.mxu1 %v2522_v23 }
  0xbc   :  { %558 = vmatpush1.bf16.msra.mxu1 %v2520_v24  ;;  %v2636_v24 = vld [vmem:[#allocation8 + $0x334] ss:$24 sps:$4 sm:$0xff]  }
  0xbd   :  { %559 = vmatprep.subr.bf16.mxu1 %v2525_v25  ;;  %v2639_v25 = vld [vmem:[#allocation8 + $0x33c] ss:$24 sps:$4 sm:$0xff]  }
  0xc0   :  { %560 = vmatpush1.bf16.msra.mxu1 %v2523_v26  ;;  %v2634_v26 = vld [vmem:[#allocation8 + $0x330] ss:$24 sps:$4 sm:$0xff]  }
  0xc1   :  { %561 = vmatprep.subr.bf16.mxu1 %v2528_v27  ;;  %v2637_v27 = vld [vmem:[#allocation8 + $0x338] ss:$24 sps:$4 sm:$0xff]  }
  0xc4   :  { %562 = vmatpush1.bf16.msra.mxu1 %v2526_v28  ;;  %v2642_v28 = vld [vmem:[#allocation8 + $0x364] ss:$24 sps:$4 sm:$0xff]  }
  0xc5   :  { %563 = vmatprep.subr.bf16.mxu1 %v2531_v29  ;;  %v2645_v29 = vld [vmem:[#allocation8 + $0x36c] ss:$24 sps:$4 sm:$0xff]  }
  0xc8   :  { %564 = vmatpush1.bf16.msra.mxu1 %v2529_v30  ;;  %v2640_v30 = vld [vmem:[#allocation8 + $0x360] ss:$24 sps:$4 sm:$0xff]  }
  0xc9   :  { %1848 = vmatprep.subr.bf16.mxu1 %v2537_v31  ;;  %v2643_v31 = vld [vmem:[#allocation8 + $0x368] ss:$24 sps:$4 sm:$0xff]  }
  0xcb   :  { %566 = vmatmul.mubr.bf16.vlgmr.msra.gmra.mrb[4].mxu1 %v3040_v46  ;;  %v2571_v46 = vld [vmem:[#allocation8 + $0x128] ss:$24 sps:$4 sm:$0xff]  }
  0xcc   :  { %1849 = vmatpush1.bf16.msra.mxu1 %v2535_v32  ;;  %v2648_v32 = vld [vmem:[#allocation8 + $0x394] ss:$24 sps:$4 sm:$0xff]  }
  0xcd   :  { %1850 = vmatprep.subr.bf16.mxu1 %v2543_v33  ;;  %v2651_v33 = vld [vmem:[#allocation8 + $0x39c] ss:$24 sps:$4 sm:$0xff]  }
  0xd0   :  { %1851 = vmatpush1.bf16.msra.mxu1 %v2541_v34  ;;  %v2646_v34 = vld [vmem:[#allocation8 + $0x390] ss:$24 sps:$4 sm:$0xff]  }
  0xd1   :  { %1852 = vmatprep.subr.bf16.mxu1 %v2549_v35  ;;  %v2649_v35 = vld [vmem:[#allocation8 + $0x398] ss:$24 sps:$4 sm:$0xff]  }
  0xd4   :  { %1853 = vmatpush1.bf16.msra.mxu1 %v2547_v36  ;;  %v2654_v36 = vld [vmem:[#allocation8 + $0x3c4] ss:$24 sps:$4 sm:$0xff]  }
  0xd5   :  { %1854 = vmatprep.subr.bf16.mxu1 %v2555_v37  ;;  %v2657_v37 = vld [vmem:[#allocation8 + $0x3cc] ss:$24 sps:$4 sm:$0xff]  }
  0xd8   :  { %1855 = vmatpush1.bf16.msra.mxu1 %v2553_v38  ;;  %v2652_v38 = vld [vmem:[#allocation8 + $0x3c0] ss:$24 sps:$4 sm:$0xff]  }
  0xd9   :  { %1856 = vmatprep.subr.bf16.mxu1 %v2561_v39  ;;  %v2655_v39 = vld [vmem:[#allocation8 + $0x3c8] ss:$24 sps:$4 sm:$0xff]  }
  0xdc   :  { %1857 = vmatpush1.bf16.msra.mxu1 %v2559_v40  ;;  %v2660_v40 = vld [vmem:[#allocation8 + $0x3f4] ss:$24 sps:$4 sm:$0xff]  }
  0xdd   :  { %1858 = vmatprep.subr.bf16.mxu1 %v2567_v41  ;;  %v2663_v41 = vld [vmem:[#allocation8 + $0x3fc] ss:$24 sps:$4 sm:$0xff]  }
  0xe0   :  { %1859 = vmatpush1.bf16.msra.mxu1 %v2565_v42  ;;  %v2658_v42 = vld [vmem:[#allocation8 + $0x3f0] ss:$24 sps:$4 sm:$0xff]  }
  0xe1   :  { %1860 = vmatprep.subr.bf16.mxu1 %v2573_v44  ;;  %v2666_v44 = vld [vmem:[#allocation8 + $0x424] ss:$24 sps:$4 sm:$0xff]  }
  0xe4   :  { %1861 = vmatpush1.bf16.msra.mxu1 %v2571_v46  ;;  %v2664_v46 = vld [vmem:[#allocation8 + $0x420] ss:$24 sps:$4 sm:$0xff]  }
  0xe5   :  { %1862 = vmatprep.subr.bf16.mxu1 %v2579_v48  ;;  %v2672_v48 = vld [vmem:[#allocation8 + $0x454] ss:$24 sps:$4 sm:$0xff]  }
  0xe8   :  { %1863 = vmatpush1.bf16.msra.mxu1 %v2577_v50  ;;  %v2670_v50 = vld [vmem:[#allocation8 + $0x450] ss:$24 sps:$4 sm:$0xff]  }
  0xe9   :  { %1864 = vmatprep.subr.bf16.mxu1 %v2585_v52  ;;  %v2678_v52 = vld [vmem:[#allocation8 + $0x484] ss:$24 sps:$4 sm:$0xff]  }
  0xec   :  { %1865 = vmatpush1.bf16.msra.mxu1 %v2583_v53  ;;  %v2681_v53 = vld [vmem:[#allocation8 + $0x48c] ss:$24 sps:$4 sm:$0xff]  }
  0xed   :  { %1866 = vmatprep.subr.bf16.mxu1 %v2591_v54  ;;  %v2676_v54 = vld [vmem:[#allocation8 + $0x480] ss:$24 sps:$4 sm:$0xff]  }
  0xf0   :  { %1867 = vmatpush1.bf16.msra.mxu1 %v2589_v55  ;;  %v2679_v55 = vld [vmem:[#allocation8 + $0x488] ss:$24 sps:$4 sm:$0xff]  }
  0xf1   :  { %1868 = vmatprep.subr.bf16.mxu1 %v2597_v56  ;;  %v2684_v56 = vld [vmem:[#allocation8 + $0x4b4] ss:$24 sps:$4 sm:$0xff]  }
  0xf4   :  { %1869 = vmatpush1.bf16.msra.mxu1 %v2595_v57  ;;  %v2687_v57 = vld [vmem:[#allocation8 + $0x4bc] ss:$24 sps:$4 sm:$0xff]  }
  0xf5   :  { %1870 = vmatprep.subr.bf16.mxu1 %v2603_v58  ;;  %v2682_v58 = vld [vmem:[#allocation8 + $0x4b0] ss:$24 sps:$4 sm:$0xff]  }
  0xf8   :  { %1871 = vmatpush1.bf16.msra.mxu1 %v2601_v59  ;;  %v2685_v59 = vld [vmem:[#allocation8 + $0x4b8] ss:$24 sps:$4 sm:$0xff]  }
  0xf9   :  { %1872 = vmatprep.subr.bf16.mxu1 %v2609_v60  ;;  %v2690_v60 = vld [vmem:[#allocation8 + $0x4e4] ss:$24 sps:$4 sm:$0xff]  }
  0xfc   :  { %1873 = vmatpush1.bf16.msra.mxu1 %v2607_v61  ;;  %v2693_v61 = vld [vmem:[#allocation8 + $0x4ec] ss:$24 sps:$4 sm:$0xff]  }
  0xfd   :  { %1874 = vmatprep.subr.bf16.mxu1 %v2615_v62  ;;  %v2688_v62 = vld [vmem:[#allocation8 + $0x4e0] ss:$24 sps:$4 sm:$0xff]  }
 0x100   :  { %1875 = vmatpush1.bf16.msra.mxu1 %v2613_v63  ;;  %v2691_v63 = vld [vmem:[#allocation8 + $0x4e8] ss:$24 sps:$4 sm:$0xff]  }
 0x101   :  { %1876 = vmatprep.subr.bf16.mxu1 %v2621_v0  ;;  %v2696_v0 = vld [vmem:[#allocation8 + $0x514] ss:$24 sps:$4 sm:$0xff]  }
 0x104   :  { %1877 = vmatpush1.bf16.msra.mxu1 %v2619_v1  ;;  %v2699_v1 = vld [vmem:[#allocation8 + $0x51c] ss:$24 sps:$4 sm:$0xff]  }
 0x105   :  { %1878 = vmatprep.subr.bf16.mxu1 %v2627_v2  ;;  %v2694_v2 = vld [vmem:[#allocation8 + $0x510] ss:$24 sps:$4 sm:$0xff]  }
 0x108   :  { %1879 = vmatpush1.bf16.msra.mxu1 %v2625_v3  ;;  %v2697_v3 = vld [vmem:[#allocation8 + $0x518] ss:$24 sps:$4 sm:$0xff]  }
 0x109   :  { %1889 = vmatprep.subr.bf16.mxu1 %v2633_v4  ;;  %v2702_v4 = vld [vmem:[#allocation8 + $0x544] ss:$24 sps:$4 sm:$0xff]  }
 0x15e   :  { %v526_v12 = vpop.f32.mrb[0].mxu1 }
 0x15f   :  { %v527_v13 = vadd.f32 %v526_v12, %v148_v10  ;;  %v528_v14 = vpop.f32.mrb[1].mxu1  ;;  %v2700_v10 = vld [vmem:[#allocation8 + $0x540] ss:$24 sps:$4 sm:$0xff]   ;;  %v2708_v12 = vld [vmem:[#allocation8 + $0x574] ss:$24 sps:$4 sm:$0xff]  }
 0x160   :  { %v529_v15 = vadd.f32 %v528_v14, %v152_v11  ;;  %v530_v16 = vpop.f32.mrb[2].mxu1  ;;  %v2703_v11 = vld [vmem:[#allocation8 + $0x548] ss:$24 sps:$4 sm:$0xff]   ;;  %v3068_v14 = vsub.s32 2, %v3045_v6 }
 0x161   :  { %v574_v17 = vmax.f32 %v527_v13, 0.0  ;;  %v531_v18 = vpop.f32.mrb[3].mxu1  ;;  %v2711_v13 = vld [vmem:[#allocation8 + $0x57c] ss:$24 sps:$4 sm:$0xff]   ;;  %v2709_v16 = vld [vmem:[#allocation8 + $0x578] ss:$24 sps:$4 sm:$0xff]  }
 0x162   :  { %v575_v19 = vmax.f32 %v529_v15, 0.0  ;;  %v2706_v15 = vld [vmem:[#allocation8 + $0x570] ss:$24 sps:$4 sm:$0xff]   ;;  %v2714_v18 = vld [vmem:[#allocation8 + $0x5a4] ss:$24 sps:$4 sm:$0xff]  }
 0x163   :  { %v3061_v23 = vpack.c.bf16 %v574_v17, %v574_v17  ;;  %v3071_v17 = vsub.s32 3, %v3045_v6 }
 0x164   :  { %v3059_v20 = vpack.c.bf16 %v575_v19, %v575_v19  ;;  %v2717_v19 = vld [vmem:[#allocation8 + $0x5ac] ss:$24 sps:$4 sm:$0xff]  }
 0x166   :  { %1798 = vmatprep.mubr.bf16.mxu0 %v3059_v20  ;;  %1880 = vmatprep.mubr.bf16.mxu1 %v3059_v20 }
 0x167   :  { %1799 = vmatmul.mubr.bf16.vlgmr.msra.gmra.mrb[0].mxu0 %v3061_v23  ;;  %1881 = vmatmul.mubr.bf16.vlgmr.msra.gmra.mrb[8].mxu1 %v3061_v23 }
 0x168   :  { %1808 = vmatpush1.bf16.msra.mxu0 %v2628_v21  ;;  %1890 = vmatpush1.bf16.msra.mxu1 %v2631_v22  ;;  %v156_v21 = vrot.slane %v3050_v8, %v3068_v14  ;;  %v2712_v22 = vld [vmem:[#allocation8 + $0x5a0] ss:$24 sps:$4 sm:$0xff]  }
 0x169   :  { %1809 = vmatprep.subr.bf16.mxu0 %v2636_v24  ;;  %1891 = vmatprep.subr.bf16.mxu1 %v2639_v25  ;;  %v160_v24 = vrot.slane %v3050_v8, %v3071_v17  ;;  %v2715_v25 = vld [vmem:[#allocation8 + $0x5a8] ss:$24 sps:$4 sm:$0xff]  }
 0x16c   :  { %1810 = vmatpush1.bf16.msra.mxu0 %v2634_v26  ;;  %1892 = vmatpush1.bf16.msra.mxu1 %v2637_v27  ;;  %v2720_v26 = vld [vmem:[#allocation8 + $0x5d4] ss:$24 sps:$4 sm:$0xff]  }
 0x16d   :  { %1811 = vmatprep.subr.bf16.mxu0 %v2642_v28  ;;  %1893 = vmatprep.subr.bf16.mxu1 %v2645_v29  ;;  %v2723_v27 = vld [vmem:[#allocation8 + $0x5dc] ss:$24 sps:$4 sm:$0xff]  }
 0x170   :  { %1812 = vmatpush1.bf16.msra.mxu0 %v2640_v30  ;;  %1894 = vmatpush1.bf16.msra.mxu1 %v2643_v31 }
 0x171   :  { %1813 = vmatprep.subr.bf16.mxu0 %v2648_v32  ;;  %1895 = vmatprep.subr.bf16.mxu1 %v2651_v33  ;;  %v2718_v33 = vld [vmem:[#allocation8 + $0x5d0] ss:$24 sps:$4 sm:$0xff]  }
 0x174   :  { %1814 = vmatpush1.bf16.msra.mxu0 %v2646_v34  ;;  %1896 = vmatpush1.bf16.msra.mxu1 %v2649_v35  ;;  %v2721_v34 = vld [vmem:[#allocation8 + $0x5d8] ss:$24 sps:$4 sm:$0xff]  }
 0x175   :  { %1815 = vmatprep.subr.bf16.mxu0 %v2654_v36  ;;  %1897 = vmatprep.subr.bf16.mxu1 %v2657_v37  ;;  %v2726_v37 = vld [vmem:[#allocation8 + $0x14] ss:$24 sps:$4 sm:$0xff]  }
 0x178   :  { %1816 = vmatpush1.bf16.msra.mxu0 %v2652_v38  ;;  %1898 = vmatpush1.bf16.msra.mxu1 %v2655_v39  ;;  %v2724_v39 = vld [vmem:[#allocation8 + $0x10] ss:$24 sps:$4 sm:$0xff]  }
 0x179   :  { %1817 = vmatprep.subr.bf16.mxu0 %v2660_v40  ;;  %1899 = vmatprep.subr.bf16.mxu1 %v2663_v41  ;;  %v2729_v41 = vld [vmem:[#allocation8 + $0x44] ss:$24 sps:$4 sm:$0xff]  }
 0x17c   :  { %1818 = vmatpush1.bf16.msra.mxu0 %v2658_v42  ;;  %1900 = vmatpush1.bf16.msra.mxu1 %v2661_v43  ;;  %v2727_v42 = vld [vmem:[#allocation8 + $0x40] ss:$24 sps:$4 sm:$0xff]   ;;  %v2732_v43 = vld [vmem:[#allocation8 + $0x74] ss:$24 sps:$4 sm:$0xff]  }
 0x17d   :  { %1819 = vmatprep.subr.bf16.mxu0 %v2666_v44  ;;  %1901 = vmatprep.subr.bf16.mxu1 %v2669_v45  ;;  %v2730_v44 = vld [vmem:[#allocation8 + $0x70] ss:$24 sps:$4 sm:$0xff]   ;;  %v2735_v45 = vld [vmem:[#allocation8 + $0xa4] ss:$24 sps:$4 sm:$0xff]  }
 0x180   :  { %1820 = vmatpush1.bf16.msra.mxu0 %v2664_v46  ;;  %1902 = vmatpush1.bf16.msra.mxu1 %v2667_v47  ;;  %v2733_v46 = vld [vmem:[#allocation8 + $0xa0] ss:$24 sps:$4 sm:$0xff]   ;;  %v2738_v47 = vld [vmem:[#allocation8 + $0xd4] ss:$24 sps:$4 sm:$0xff]  }
 0x181   :  { %1821 = vmatprep.subr.bf16.mxu0 %v2672_v48  ;;  %1903 = vmatprep.subr.bf16.mxu1 %v2675_v49  ;;  %v2736_v48 = vld [vmem:[#allocation8 + $0xd0] ss:$24 sps:$4 sm:$0xff]   ;;  %v2741_v49 = vld [vmem:[#allocation8 + $0x104] ss:$24 sps:$4 sm:$0xff]  }
 0x184   :  { %1822 = vmatpush1.bf16.msra.mxu0 %v2670_v50  ;;  %1904 = vmatpush1.bf16.msra.mxu1 %v2673_v51  ;;  %v2739_v50 = vld [vmem:[#allocation8 + $0x100] ss:$24 sps:$4 sm:$0xff]   ;;  %v2744_v51 = vld [vmem:[#allocation8 + $0x134] ss:$24 sps:$4 sm:$0xff]  }
 0x185   :  { %1823 = vmatprep.subr.bf16.mxu0 %v2678_v52  ;;  %1905 = vmatprep.subr.bf16.mxu1 %v2681_v53  ;;  %v2747_v52 = vld [vmem:[#allocation8 + $0x164] ss:$24 sps:$4 sm:$0xff]   ;;  %v2745_v53 = vld [vmem:[#allocation8 + $0x160] ss:$24 sps:$4 sm:$0xff]  }
 0x188   :  { %1824 = vmatpush1.bf16.msra.mxu0 %v2676_v54  ;;  %1906 = vmatpush1.bf16.msra.mxu1 %v2679_v55  ;;  %v2750_v54 = vld [vmem:[#allocation8 + $0x194] ss:$24 sps:$4 sm:$0xff]   ;;  %v2748_v55 = vld [vmem:[#allocation8 + $0x190] ss:$24 sps:$4 sm:$0xff]  }
 0x189   :  { %1825 = vmatprep.subr.bf16.mxu0 %v2684_v56  ;;  %1907 = vmatprep.subr.bf16.mxu1 %v2687_v57  ;;  %v2753_v56 = vld [vmem:[#allocation8 + $0x1c4] ss:$24 sps:$4 sm:$0xff]   ;;  %v2751_v57 = vld [vmem:[#allocation8 + $0x1c0] ss:$24 sps:$4 sm:$0xff]  }
 0x18c   :  { %1826 = vmatpush1.bf16.msra.mxu0 %v2682_v58  ;;  %1908 = vmatpush1.bf16.msra.mxu1 %v2685_v59  ;;  %v2756_v58 = vld [vmem:[#allocation8 + $0x1f4] ss:$24 sps:$4 sm:$0xff]   ;;  %v2754_v59 = vld [vmem:[#allocation8 + $0x1f0] ss:$24 sps:$4 sm:$0xff]  }
 0x18d   :  { %1827 = vmatprep.subr.bf16.mxu0 %v2690_v60  ;;  %1909 = vmatprep.subr.bf16.mxu1 %v2693_v61  ;;  %v2759_v60 = vld [vmem:[#allocation8 + $0x224] ss:$24 sps:$4 sm:$0xff]   ;;  %v2757_v61 = vld [vmem:[#allocation8 + $0x220] ss:$24 sps:$4 sm:$0xff]  }
 0x190   :  { %1828 = vmatpush1.bf16.msra.mxu0 %v2688_v62  ;;  %1910 = vmatpush1.bf16.msra.mxu1 %v2691_v63  ;;  %v2762_v62 = vld [vmem:[#allocation8 + $0x254] ss:$24 sps:$4 sm:$0xff]   ;;  %v2760_v63 = vld [vmem:[#allocation8 + $0x250] ss:$24 sps:$4 sm:$0xff]  }
 0x191   :  { %1829 = vmatprep.subr.bf16.mxu0 %v2696_v0  ;;  %1911 = vmatprep.subr.bf16.mxu1 %v2699_v1  ;;  %v2765_v0 = vld [vmem:[#allocation8 + $0x284] ss:$24 sps:$4 sm:$0xff]   ;;  %v2763_v1 = vld [vmem:[#allocation8 + $0x280] ss:$24 sps:$4 sm:$0xff]  }
 0x194   :  { %1830 = vmatpush1.bf16.msra.mxu0 %v2694_v2  ;;  %1912 = vmatpush1.bf16.msra.mxu1 %v2697_v3  ;;  %v2768_v2 = vld [vmem:[#allocation8 + $0x2b4] ss:$24 sps:$4 sm:$0xff]   ;;  %v2766_v3 = vld [vmem:[#allocation8 + $0x2b0] ss:$24 sps:$4 sm:$0xff]  }
 0x195   :  { %1831 = vmatprep.subr.bf16.mxu0 %v2702_v4  ;;  %1913 = vmatprep.subr.bf16.mxu1 %v2705_v5  ;;  %v2771_v4 = vld [vmem:[#allocation8 + $0x2e4] ss:$24 sps:$4 sm:$0xff]   ;;  %v2769_v5 = vld [vmem:[#allocation8 + $0x2e0] ss:$24 sps:$4 sm:$0xff]  }
 0x198   :  { %1832 = vmatpush1.bf16.msra.mxu0 %v2700_v10  ;;  %1914 = vmatpush1.bf16.msra.mxu1 %v2703_v11  ;;  %v2774_v10 = vld [vmem:[#allocation8 + $0x314] ss:$24 sps:$4 sm:$0xff]   ;;  %v2772_v11 = vld [vmem:[#allocation8 + $0x310] ss:$24 sps:$4 sm:$0xff]  }
 0x199   :  { %1833 = vmatprep.subr.bf16.mxu0 %v2708_v12  ;;  %1915 = vmatprep.subr.bf16.mxu1 %v2711_v13  ;;  %v2777_v12 = vld [vmem:[#allocation8 + $0x344] ss:$24 sps:$4 sm:$0xff]   ;;  %v2775_v13 = vld [vmem:[#allocation8 + $0x340] ss:$24 sps:$4 sm:$0xff]  }
 0x19c   :  { %1834 = vmatpush1.bf16.msra.mxu0 %v2706_v15  ;;  %1916 = vmatpush1.bf16.msra.mxu1 %v2709_v16  ;;  %v2780_v15 = vld [vmem:[#allocation8 + $0x374] ss:$24 sps:$4 sm:$0xff]   ;;  %v2778_v16 = vld [vmem:[#allocation8 + $0x370] ss:$24 sps:$4 sm:$0xff]  }
 0x19d   :  { %1835 = vmatprep.subr.bf16.mxu0 %v2714_v18  ;;  %1917 = vmatprep.subr.bf16.mxu1 %v2717_v19  ;;  %v2783_v18 = vld [vmem:[#allocation8 + $0x3a4] ss:$24 sps:$4 sm:$0xff]   ;;  %v2781_v19 = vld [vmem:[#allocation8 + $0x3a0] ss:$24 sps:$4 sm:$0xff]  }
 0x19e   :  { %v567_v28 = vpop.f32.mrb[4].mxu1 }
 0x19f   :  { %v568_v29 = vadd.f32 %v567_v28, %v156_v21  ;;  %v569_v30 = vpop.f32.mrb[5].mxu1  ;;  %v2786_v21 = vld [vmem:[#allocation8 + $0x3d4] ss:$24 sps:$4 sm:$0xff]   ;;  %v2793_v28 = vld [vmem:[#allocation8 + $0x460] ss:$24 sps:$4 sm:$0xff]  }
 0x1a0   :  { %v570_v31 = vadd.f32 %v569_v30, %v160_v24  ;;  %1836 = vmatpush1.bf16.msra.mxu0 %v2712_v22  ;;  %v571_v32 = vpop.f32.mrb[6].mxu1  ;;  %1918 = vmatpush1.bf16.msra.mxu1 %v2715_v25  ;;  %v2784_v22 = vld [vmem:[#allocation8 + $0x3d0] ss:$24 sps:$4 sm:$0xff]   ;;  %v2789_v24 = vld [vmem:[#allocation8 + $0x404] ss:$24 sps:$4 sm:$0xff]  }
 0x1a1   :  { %v576_v35 = vmax.f32 %v568_v29, 0.0  ;;  %v572_v36 = vpop.f32.mrb[7].mxu1  ;;  %1837 = vmatprep.subr.bf16.mxu0 %v2720_v26  ;;  %1919 = vmatprep.subr.bf16.mxu1 %v2723_v27  ;;  %v2792_v25 = vld [vmem:[#allocation8 + $0x434] ss:$24 sps:$4 sm:$0xff]   ;;  %v2790_v26 = vld [vmem:[#allocation8 + $0x430] ss:$24 sps:$4 sm:$0xff]  }
 0x1a2   :  { %v577_v8 = vmax.f32 %v570_v31, 0.0  ;;  %v2795_v27 = vld [vmem:[#allocation8 + $0x464] ss:$24 sps:$4 sm:$0xff]   ;;  %v2798_v29 = vld [vmem:[#allocation8 + $0x494] ss:$24 sps:$4 sm:$0xff]  }
 0x1a3   :  { %v3079_v40 = vpack.c.bf16 %v576_v35, %v576_v35  ;;  %v2796_v30 = vld [vmem:[#allocation8 + $0x490] ss:$24 sps:$4 sm:$0xff]   ;;  %v2801_v31 = vld [vmem:[#allocation8 + $0x4c4] ss:$24 sps:$4 sm:$0xff]   ;;  %v2799_v32 = vld [vmem:[#allocation8 + $0x4c0] ss:$24 sps:$4 sm:$0xff]  }
 0x1a4   :  { %v3077_v38 = vpack.c.bf16 %v577_v8, %v577_v8  ;;  %1838 = vmatpush1.bf16.msra.mxu0 %v2718_v33  ;;  %1920 = vmatpush1.bf16.msra.mxu1 %v2721_v34  ;;  %v2804_v33 = vld [vmem:[#allocation8 + $0x4f4] ss:$24 sps:$4 sm:$0xff]   ;;  %v2802_v34 = vld [vmem:[#allocation8 + $0x4f0] ss:$24 sps:$4 sm:$0xff]   ;;  %v2807_v35 = vld [vmem:[#allocation8 + $0x524] ss:$24 sps:$4 sm:$0xff]  }
 0x1a5   :  { %1930 = vmatprep.subr.bf16.mxu0 %v2726_v37  ;;  %v2805_v36 = vld [vmem:[#allocation8 + $0x520] ss:$24 sps:$4 sm:$0xff]   ;;  %v2810_v37 = vld [vmem:[#allocation8 + $0x554] ss:$24 sps:$4 sm:$0xff]   ;;  %v2808_v8 = vld [vmem:[#allocation8 + $0x550] ss:$24 sps:$4 sm:$0xff]  }
 0x1a6   :  { %1839 = vmatprep.mubr.bf16.mxu0 %v3077_v38  ;;  %1921 = vmatprep.mubr.bf16.mxu1 %v3077_v38 }
 0x1a7   :  { %1840 = vmatmul.mubr.bf16.vlgmr.msra.gmra.mrb[0].mxu0 %v3079_v40  ;;  %1922 = vmatmul.mubr.bf16.vlgmr.msra.gmra.mrb[8].mxu1 %v3079_v40 }
 0x1a8   :  { %1931 = vmatpush1.bf16.msra.mxu0 %v2724_v39  ;;  %1962 = vmatprep.mubr.bf16.mxu0 %v3059_v20  ;;  %v2742_v20 = vld [vmem:[#allocation8 + $0x130] ss:$24 sps:$4 sm:$0xff]   ;;  %v2811_v39 = vld [vmem:[#allocation8 + $0x580] ss:$24 sps:$4 sm:$0xff]  }
 0x1a9   :  { %1932 = vmatprep.subr.bf16.mxu0 %v2729_v41  ;;  %v2816_v41 = vld [vmem:[#allocation8 + $0x5b4] ss:$24 sps:$4 sm:$0xff]  }
 0x1ac   :  { %1933 = vmatpush1.bf16.msra.mxu0 %v2727_v42  ;;  %v2814_v42 = vld [vmem:[#allocation8 + $0x5b0] ss:$24 sps:$4 sm:$0xff]  }
 0x1ad   :  { %1934 = vmatprep.subr.bf16.mxu0 %v2732_v43  ;;  %v2819_v43 = vld [vmem:[#allocation8 + $0x5e4] ss:$24 sps:$4 sm:$0xff]  }
 0x1b0   :  { %1935 = vmatpush1.bf16.msra.mxu0 %v2730_v44  ;;  %v2817_v44 = vld [vmem:[#allocation8 + $0x5e0] ss:$24 sps:$4 sm:$0xff]  }
 0x1b1   :  { %1936 = vmatprep.subr.bf16.mxu0 %v2735_v45 }
 0x1b4   :  { %1937 = vmatpush1.bf16.msra.mxu0 %v2733_v46 }
 0x1b5   :  { %1938 = vmatprep.subr.bf16.mxu0 %v2738_v47 }
 0x1b8   :  { %1939 = vmatpush1.bf16.msra.mxu0 %v2736_v48 }
 0x1b9   :  { %1940 = vmatprep.subr.bf16.mxu0 %v2741_v49 }
 0x1bc   :  { %1941 = vmatpush1.bf16.msra.mxu0 %v2739_v50 }
 0x1bd   :  { %1942 = vmatprep.subr.bf16.mxu0 %v2744_v51 }
 0x1c0   :  { %1943 = vmatpush1.bf16.msra.mxu0 %v2742_v20 }
 0x1c1   :  { %1944 = vmatprep.subr.bf16.mxu0 %v2747_v52  ;;  %v774_v52 = vld [vmem:[%s3138_s4] sm:$0x3f] }
 0x1c4   :  { %1945 = vmatpush1.bf16.msra.mxu0 %v2745_v53  ;;  %v779_v53 = vrot.slane %v774_v52, %v3048_v7 }
 0x1c5   :  { %1946 = vmatprep.subr.bf16.mxu0 %v2750_v54  ;;  %v783_v54 = vrot.slane %v774_v52, %v3053_v9 }
 0x1c8   :  { %1947 = vmatpush1.bf16.msra.mxu0 %v2748_v55 }
 0x1c9   :  { %1948 = vmatprep.subr.bf16.mxu0 %v2753_v56 }
 0x1cc   :  { %1949 = vmatpush1.bf16.msra.mxu0 %v2751_v57 }
 0x1cd   :  { %1950 = vmatprep.subr.bf16.mxu0 %v2756_v58 }
 0x1d0   :  { %1951 = vmatpush1.bf16.msra.mxu0 %v2754_v59 }
 0x1d1   :  { %1952 = vmatprep.subr.bf16.mxu0 %v2759_v60 }
 0x1d4   :  { %1953 = vmatpush1.bf16.msra.mxu0 %v2757_v61  ;;  %v791_v61 = vrot.slane %v774_v52, %v3071_v17 }
 0x1d5   :  { %1954 = vmatprep.subr.bf16.mxu0 %v2762_v62  ;;  %v3097_v62 = vsub.s32 4, %v3045_v6 }
 0x1d8   :  { %1955 = vmatpush1.bf16.msra.mxu0 %v2760_v63  ;;  %v3100_v63 = vsub.s32 5, %v3045_v6 }
 0x1d9   :  { %1956 = vmatprep.subr.bf16.mxu0 %v2765_v0 }
 0x1dc   :  { %1957 = vmatpush1.bf16.msra.mxu0 %v2763_v1 }
 0x1dd   :  { %1958 = vmatprep.subr.bf16.mxu0 %v2768_v2 }
 0x1e0   :  { %1959 = vmatpush1.bf16.msra.mxu0 %v2766_v3  ;;  %v795_v3 = vrot.slane %v774_v52, %v3097_v62 }
 0x1e1   :  { %1960 = vmatprep.subr.bf16.mxu0 %v2771_v4 }
 0x1e4   :  { %1961 = vmatpush1.bf16.msra.mxu0 %v2769_v5  ;;  %v799_v5 = vrot.slane %v774_v52, %v3100_v63 }
 0x1e5   :  { %1971 = vmatprep.subr.bf16.mxu0 %v2774_v10 }
 0x1e7   :  { %1963 = vmatmul.mubr.bf16.vlgmr.msra.gmra.mrb[4].mxu0 %v3061_v23  ;;  %v2787_v23 = vld [vmem:[#allocation8 + $0x400] ss:$24 sps:$4 sm:$0xff]  }
 0x1e8   :  { %1972 = vmatpush1.bf16.msra.mxu0 %v2772_v11  ;;  %2003 = vmatprep.mubr.bf16.mxu0 %v3077_v38  ;;  %v2813_v38 = vld [vmem:[#allocation8 + $0x584] ss:$24 sps:$4 sm:$0xff]  }
 0x1e9   :  { %1973 = vmatprep.subr.bf16.mxu0 %v2777_v12 }
 0x1ec   :  { %1974 = vmatpush1.bf16.msra.mxu0 %v2775_v13 }
 0x1ed   :  { %1975 = vmatprep.subr.bf16.mxu0 %v2780_v15 }
 0x1f0   :  { %1976 = vmatpush1.bf16.msra.mxu0 %v2778_v16 }
 0x1f1   :  { %1977 = vmatprep.subr.bf16.mxu0 %v2783_v18 }
 0x1f4   :  { %1978 = vmatpush1.bf16.msra.mxu0 %v2781_v19 }
 0x1f5   :  { %1979 = vmatprep.subr.bf16.mxu0 %v2786_v21 }
 0x1f8   :  { %1980 = vmatpush1.bf16.msra.mxu0 %v2784_v22 }
 0x1f9   :  { %1981 = vmatprep.subr.bf16.mxu0 %v2789_v24 }
 0x1fc   :  { %1982 = vmatpush1.bf16.msra.mxu0 %v2787_v23 }
 0x1fd   :  { %1983 = vmatprep.subr.bf16.mxu0 %v2792_v25 }
 0x200   :  { %1984 = vmatpush1.bf16.msra.mxu0 %v2790_v26 }
 0x201   :  { %1985 = vmatprep.subr.bf16.mxu0 %v2795_v27 }
 0x204   :  { %1986 = vmatpush1.bf16.msra.mxu0 %v2793_v28 }
 0x205   :  { %1987 = vmatprep.subr.bf16.mxu0 %v2798_v29 }
 0x208   :  { %1988 = vmatpush1.bf16.msra.mxu0 %v2796_v30 }
 0x209   :  { %1989 = vmatprep.subr.bf16.mxu0 %v2801_v31 }
 0x20c   :  { %1990 = vmatpush1.bf16.msra.mxu0 %v2799_v32 }
 0x20d   :  { %1991 = vmatprep.subr.bf16.mxu0 %v2804_v33 }
 0x210   :  { %1992 = vmatpush1.bf16.msra.mxu0 %v2802_v34 }
 0x211   :  { %1993 = vmatprep.subr.bf16.mxu0 %v2807_v35  ;;  %v2050_v35 = vld [vmem:[%s3139_s5] sm:$0x3f]  ;;  %s2948_s5 = smov [#allocation10]  }
 0x214   :  { %1994 = vmatpush1.bf16.msra.mxu0 %v2805_v36  ;;  %v2088_v36 = vld [vmem:[%s3140_s6] sm:$0x3f]  ;;  %s2138_s6 = sshll.u32 %s2948_s5, 4  ;;  %s2139_s6 = int_to_ptr.vmem [resolvable:$true] %s2138_s6 }
 0x215   :  { %1995 = vmatprep.subr.bf16.mxu0 %v2810_v37  ;;  %v2055_v37 = vrot.slane %v2050_v35, %v3048_v7  ;;  %s2910_s30 = scalar_lea.vmem %s2139_s6, 768  ;;  %p2915_p5 = scmp.lt.s32.totalorder %s2139_s6, %s2139_s6 }
 0x216   :  { %p2911_p4 = scmp.ne.s32.totalorder %s2139_s6, %s2910_s30  ;;  %p2916_p6 = scmp.lt.s32.totalorder %s2910_s30, %s2910_s30 }
 0x218   :  { %1996 = vmatpush1.bf16.msra.mxu0 %v2808_v8  ;;  %v2093_v8 = vrot.slane %v2088_v36, %v3048_v7  ;;  %v2075_v7 = vrot.slane %v2050_v35, %v3100_v63  ;;  %p2917_p7 = por %p2916_p6, %p2915_p5 }
 0x219   :  { %1997 = vmatprep.subr.bf16.mxu0 %v2813_v38  ;;  %v2059_v38 = vrot.slane %v2050_v35, %v3053_v9 }
 0x21a   :  { %p2918_p8 = pnand %p2917_p7, %p2911_p4 }
 0x21c   :  { %1998 = vmatpush1.bf16.msra.mxu0 %v2811_v39  ;;  %v2097_v39 = vrot.slane %v2088_v36, %v3053_v9 }
 0x21d   :  { %1999 = vmatprep.subr.bf16.mxu0 %v2816_v41  ;;  %v2063_v41 = vrot.slane %v2050_v35, %v3068_v14 }
 0x220   :  { %2000 = vmatpush1.bf16.msra.mxu0 %v2814_v42  ;;  %v2101_v42 = vrot.slane %v2088_v36, %v3068_v14 }
 0x221   :  { %2001 = vmatprep.subr.bf16.mxu0 %v2819_v43  ;;  %v2067_v43 = vrot.slane %v2050_v35, %v3071_v17 }
 0x224   :  { %2002 = vmatpush1.bf16.msra.mxu0 %v2817_v44  ;;  %v2105_v44 = vrot.slane %v2088_v36, %v3071_v17 }
 0x227   :  { %2004 = vmatmul.mubr.bf16.vlgmr.msra.gmra.mrb[4].mxu0 %v3079_v40  ;;  %v787_v40 = vrot.slane %v774_v52, %v3068_v14  ;;  %v2109_v14 = vrot.slane %v2088_v36, %v3097_v62 }
 0x27a   :  { %v1841_v45 = vpop.f32.mrb[0].mxu0  ;;  %v1923_v46 = vpop.f32.mrb[8].mxu1 }
 0x27b   :  { %v1843_v47 = vpop.f32.mrb[1].mxu0  ;;  %v1925_v48 = vpop.f32.mrb[9].mxu1  ;;  %v2407_v55 = vadd.f32 %v1841_v45, %v779_v53  ;;  %v2409_v59 = vadd.f32 %v1923_v46, %v787_v40  ;;  %v2113_v40 = vrot.slane %v2088_v36, %v3100_v63 }
 0x27c   :  { %v1845_v49 = vpop.f32.mrb[2].mxu0  ;;  %v1927_v50 = vpop.f32.mrb[10].mxu1  ;;  %v2408_v56 = vadd.f32 %v1843_v47, %v783_v54  ;;  %v2410_v2 = vadd.f32 %v1925_v48, %v791_v61 }
 0x27d   :  { %v1846_v51 = vpop.f32.mrb[3].mxu0  ;;  %v1928_v20 = vpop.f32.mrb[11].mxu1  ;;  %v2019_v57 = vmul.f32 %v2407_v55, %v2407_v55  ;;  %v2021_v1 = vmul.f32 %v2409_v59, %v2409_v59  ;;  %v2071_v50 = vrot.slane %v2050_v35, %v3097_v62 }
 0x27e   :  { %v2020_v58 = vmul.f32 %v2408_v56, %v2408_v56  ;;  %v2012_v60 = vadd.f32 %v2408_v56, %v2407_v55  ;;  %v2022_v12 = vmul.f32 %v2410_v2, %v2410_v2 }
 0x280   :  { %v2025_v0 = vadd.f32 %v2020_v58, %v2019_v57  ;;  %v2013_v4 = vadd.f32 %v2409_v59, %v2012_v60 }
 0x282   :  { %v2026_v10 = vadd.f32 %v2025_v0, %v2021_v1  ;;  %v2014_v16 = vadd.f32 %v2410_v2, %v2013_v4 }
 0x284   :  { %v2027_v24 = vadd.f32 %v2026_v10, %v2022_v12 }
 0x2fa   :  { %v2005_v11 = vpop.f32.mrb[4].mxu0 }
 0x2fb   :  { %v2411_v13 = vadd.f32 %v2005_v11, %v795_v3  ;;  %v2007_v15 = vpop.f32.mrb[5].mxu0 }
 0x2fc   :  { %v2412_v18 = vadd.f32 %v2007_v15, %v799_v5  ;;  %v2009_v19 = vpop.f32.mrb[6].mxu0 }
 0x2fd   :  { %v2023_v21 = vmul.f32 %v2411_v13, %v2411_v13  ;;  %v2010_v22 = vpop.f32.mrb[7].mxu0  ;;  %v2015_v6 = vadd.f32 %v2411_v13, %v2014_v16 }
 0x2fe   :  { %v2024_v25 = vmul.f32 %v2412_v18, %v2412_v18 }
 0x2ff   :  { %v2016_v23 = vadd.f32 %v2412_v18, %v2015_v6  ;;  %v2028_v26 = vadd.f32 %v2027_v24, %v2023_v21 }
 0x301   :  { %2017 = vadd.xlane.f32.xlu0 %v2016_v23  ;;  %v2029_v27 = vadd.f32 %v2028_v26, %v2024_v25 }
 0x305   :  { %2030 = vadd.xlane.f32.xlu0 %v2029_v27 }
 0x38e   :  { %v2018_v28 = vpop.xlane.xlu0 %2017 }
 0x38f   :  { %v2032_v29 = vmul.f32 0.0013020834, %v2018_v28 }
 0x391   :  { %v2034_v31 = vmul.f32 %v2032_v29, %v2032_v29  ;;  %v2036_v45 = vsub.f32 %v2407_v55, %v2032_v29  ;;  %v2037_v46 = vsub.f32 %v2408_v56, %v2032_v29  ;;  %v2038_v47 = vsub.f32 %v2409_v59, %v2032_v29 }
 0x392   :  { %v2031_v30 = vpop.xlane.xlu0 %2030  ;;  %v2039_v48 = vsub.f32 %v2410_v2, %v2032_v29  ;;  %v2040_v51 = vsub.f32 %v2411_v13, %v2032_v29  ;;  %v2041_v20 = vsub.f32 %v2412_v18, %v2032_v29 }
 0x393   :  { %v2033_v32 = vmul.f32 0.0013020834, %v2031_v30 }
 0x395   :  { %v2035_v33 = vsub.f32 %v2033_v32, %v2034_v31 }
 0x397   :  { %v2042_v34 = vadd.f32 1e-05, %v2035_v33 }
 0x399   :  { %2820 = vrsqrt.f32 %v2042_v34 }
 0x3a3   :  { %v2821_v49 = vpop.eup %2820 }
 0x3a4   :  { %v2044_v9 = vmul.f32 %v2821_v49, %v2036_v45  ;;  %v2045_v52 = vmul.f32 %v2821_v49, %v2037_v46  ;;  %v2046_v53 = vmul.f32 %v2821_v49, %v2038_v47  ;;  %v2047_v54 = vmul.f32 %v2821_v49, %v2039_v48 }
 0x3a5   :  { %v2048_v17 = vmul.f32 %v2821_v49, %v2040_v51  ;;  %v2049_v55 = vmul.f32 %v2821_v49, %v2041_v20 }
 0x3a6   :  { %v2082_v56 = vmul.f32 %v2055_v37, %v2044_v9  ;;  %v2083_v57 = vmul.f32 %v2059_v38, %v2045_v52  ;;  %v2084_v58 = vmul.f32 %v2063_v41, %v2046_v53  ;;  %v2085_v59 = vmul.f32 %v2067_v43, %v2047_v54 }
 0x3a7   :  { %v2086_v60 = vmul.f32 %v2071_v50, %v2048_v17  ;;  %v2087_v61 = vmul.f32 %v2075_v7, %v2049_v55 }
 0x3a8   :  { %v2120_v0 = vadd.f32 %v2093_v8, %v2082_v56  ;;  %v2121_v1 = vadd.f32 %v2097_v39, %v2083_v57  ;;  %v2122_v2 = vadd.f32 %v2101_v42, %v2084_v58  ;;  %v2123_v3 = vadd.f32 %v2105_v44, %v2085_v59 }
 0x3a9   :  { %v2124_v4 = vadd.f32 %v2109_v14, %v2086_v60  ;;  %v2125_v5 = vadd.f32 %v2113_v40, %v2087_v61 }
 0x3aa   :  { %2126 = vst [vmem:[#allocation10] sm:$0xff] %v2120_v0  ;;  %2127 = vst [vmem:[#allocation10 + $0x8] sm:$0xff] %v2121_v1 }
 0x3ab   :  { %2128 = vst [vmem:[#allocation10 + $0x10] sm:$0xff] %v2122_v2  ;;  %2129 = vst [vmem:[#allocation10 + $0x18] sm:$0xff] %v2123_v3 }
 0x3ac   :  { %2130 = vst [vmem:[#allocation10 + $0x20] sm:$0xff] %v2124_v4  ;;  %2131 = vst [vmem:[#allocation10 + $0x28] sm:$0xff] %v2125_v5 }
 0x3ad   :  { %2921 = shalt.err (!%p2918_p8)
}
 0x3ae   :  { %s2922_s10 = scalar_lea.hbm %s3141_s7, 768 }
 0x3af   :  { %p2923_p9 = scmp.ne.s32.totalorder %s3141_s7, %s2922_s10  ;;  %p2926_p10 = scmp.lt.u32.totalorder %s2922_s10, %s3141_s7 }
 0x3b1   :  { %p2928_p11 = pnand %p2926_p10, %p2923_p9 }
 0x3b3   :  { %2931 = shalt.err (!%p2928_p11)
}
 0x3b4   :  { %2141 = dma.vmem_to_hbm [thread:$0]  %s2139_s6, 768, %s3141_s7, [#allocation4]  }
 0x3b5   :  { %2938 = dma.done.wait [#allocation4], 768  }
 0x3b6   :  { %2939 = vsyncadd [#allocation4], 4294966528 }
 0x3b7   :  { %2145 = vsyncpa [#allocation3], 1 }
 0x3b8   :  { %2146 = vsyncpa [#allocation6], 1 }
 0x3b9   :  { %2147 = vsyncpa [#allocation9], 1 }
 0x3ba   :  { %2148 = vsyncpa [#allocation4], 1 }

</bundles_post_ra>
